<compile_context>
chip_gen: v5e
topology: v5e:2x2
jax: 0.10.0
libtpu: 0.0.40
codegen_flags: <defaults>
</compile_context>

<pallas_src>
import functools
import math

import jax
import jax.numpy as jnp
from jax import lax
from jax.experimental import pallas as pl
from jax.experimental.pallas import tpu as pltpu

_SQRT_HALF = 0.7071067811865476


# --------------------------------------------------------------------------
# Generation detection (bf16 elementwise support + physical VMEM capacity).
# --------------------------------------------------------------------------
def _device_kind():
    try:
        return jax.devices()[0].device_kind.lower()
    except Exception:
        return ""


def _vmem_capacity_bytes():
    kind = _device_kind()
    if "v2" in kind or "v3" in kind:
        return 16 << 20
    if "v7" in kind or "7x" in kind:      # v7x: 64 MiB per TensorCore
        return 64 << 20
    if kind:                              # v4 / v5e / v5p / v6e: 128 MiB
        return 128 << 20
    return 64 << 20                       # unknown -> conservative


def _has_bf16_vpu():
    kind = _device_kind()
    return ("v6" in kind) or ("v7" in kind) or ("7x" in kind)


# --------------------------------------------------------------------------
# GELU (exact, erf formulation) with a dtype-generic polynomial.
# --------------------------------------------------------------------------
def _gelu_erf(x):
    """0.5*x*(1+erf(x/sqrt(2))) via Abramowitz&Stegun 7.1.26 (|err|<=1.5e-7).

    Polynomial runs in x.dtype (bf16 on v6e/v7x); exp and the reciprocal stay
    f32 (EUP path with guaranteed lowering and full accuracy).
    """
    dt = x.dtype
    c = lambda v: jnp.asarray(v, dt)
    a1, a2, a3, a4, a5 = (c(0.254829592), c(-0.284496736), c(1.421413741),
                          c(-1.453152027), c(1.061405429))
    u = x * c(_SQRT_HALF)
    sign = jnp.where(u >= 0, c(1.0), c(-1.0))
    au = jnp.abs(u)
    t = pl.reciprocal(1.0 + 0.3275911 * au.astype(jnp.float32),
                      approx=True).astype(dt)
    e = jnp.exp(-(au * au).astype(jnp.float32)).astype(dt)
    poly = ((((a5 * t + a4) * t + a3) * t + a2) * t + a1) * t
    erf = sign * (c(1.0) - poly * e)
    return c(0.5) * x * (c(1.0) + erf)


# --------------------------------------------------------------------------
# Kernel body.
# --------------------------------------------------------------------------
def _convnext_kernel(K, S, ln_eps, gelu_dtype,
                     xg_ref, dw_ref, dwb_ref, lnw_ref, lnb_ref,
                     w1_ref, b1_ref, w2_ref, b2_ref, o_ref):
    # xg_ref: (C, W) slab = [pad lane guard | (TF+2*pad) feat rows x S | guard]
    # o_ref : (C, M) with M = TF*S (lane-dense output tile)
    C, M = o_ref.shape
    pad = K // 2
    Mw = M + 2 * pad                       # widened row width (holds kj shifts)

    # ---------------- depthwise KxK conv (VPU + XLU lane shifts) ------------
    # rows[ki][:, j] == xg[:, ki*S + j]; all 7 loads are static slices.
    rows = [xg_ref[:, ki * S: ki * S + Mw] for ki in range(K)]

    # Per-lane seq position (for the seq-edge zero padding of the conv).
    col = lax.broadcasted_iota(jnp.int32, (1, M), 1) % S

    acc = jnp.broadcast_to(dwb_ref[...], (C, M)).astype(jnp.float32)
    for kj in range(K):
        d = kj - pad
        # Sum over the kernel rows first (mask hoisted out of the ki loop).
        tmp = rows[0] * dw_ref[:, kj:kj + 1]
        for ki in range(1, K):
            tmp = tmp + rows[ki] * dw_ref[:, ki * K + kj: ki * K + kj + 1]
        shifted = tmp[:, kj: kj + M]        # lane shift by d (XLU rotate path)
        if d == 0:
            acc = acc + shifted
        else:
            valid = (col + d >= 0) & (col + d < S)
            acc = acc + jnp.where(valid, shifted, 0.0)

    # ---------------- LayerNorm over channels (f32 statistics) --------------
    mean = jnp.mean(acc, axis=0, keepdims=True)
    centered = acc - mean
    var = jnp.mean(centered * centered, axis=0, keepdims=True)
    y = centered * lax.rsqrt(var + ln_eps)
    y = y * lnw_ref[...] + lnb_ref[...]

    # ------- pointwise convs on the MXU: bf16 operands, f32 accumulation ----
    h = jnp.dot(w1_ref[...], y.astype(jnp.bfloat16),
                preferred_element_type=jnp.float32)
    h = h.astype(gelu_dtype) + b1_ref[...].astype(gelu_dtype)
    h = _gelu_erf(h)                        # bf16 on v6e/v7x, f32 on v5e-
    z = jnp.dot(w2_ref[...], h.astype(jnp.bfloat16),
                preferred_element_type=jnp.float32) + b2_ref[...]

    # ---------------- residual + lane-dense output store --------------------
    x_center = xg_ref[:, pad * S + pad: pad * S + pad + M]   # original tile
    o_ref[...] = (z + x_center).astype(o_ref.dtype)


# --------------------------------------------------------------------------
# Tile selection (generation-aware VMEM budget, fixed double-buffer count).
# --------------------------------------------------------------------------
def _pick_f_tile(F, S, C, Cexp, pad, K, gelu_dtype, budget_bytes):
    gb = jnp.dtype(gelu_dtype).itemsize
    cands = [tf for tf in range(1, F + 1)
             if F % tf == 0 and (tf == F or (tf * S) % 128 == 0)]

    def est(tf):
        m = tf * S
        mw = m + 2 * pad
        w = (tf + 2 * pad) * S + 2 * pad
        f4 = 4
        pipelined = 2 * f4 * C * (w + m)              # in + out, double-buffered
        depthwise = f4 * C * ((K + 1) * mw + 2 * m)   # rows, tmp, acc, centre
        norm = 2 * f4 * C * m + 2 * C * m             # centred / y f32, y bf16
        expand = Cexp * m * (f4 + 3 * gb) + f4 * C * m  # h f32, gelu temps, z
        consts = 4 * Cexp * C + f4 * (C * (K * K + 4) + Cexp) + (1 << 16)
        return pipelined + depthwise + norm + expand + consts

    for tf in sorted(cands, reverse=True):
        if est(tf) <= budget_bytes:
            return tf
    return min(cands)   # smallest legal tile (best effort if budget is tiny)


# --------------------------------------------------------------------------
# Wrapper.
# --------------------------------------------------------------------------
def convnext_layer(x_nchw, params, *, kernel_size=7, ln_eps=1e-12,
                   f_tile=None, gelu_dtype=None):
    """x_nchw: [B, C, F, S] float32 -> [B, C, F, S] float32 (PyTorch layouts)."""
    dw_w, dw_b, ln_w, ln_b, w1, b1, w2, b2 = params
    B, C, F, S = x_nchw.shape
    K = kernel_size
    pad = K // 2
    Cexp = w1.shape[0]

    if gelu_dtype is None:
        gelu_dtype = jnp.bfloat16 if _has_bf16_vpu() else jnp.float32

    cap = _vmem_capacity_bytes()
    budget = int(0.40 * cap)
    vmem_limit = int(0.70 * cap)

    TF = (_pick_f_tile(F, S, C, Cexp, pad, K, gelu_dtype, budget)
          if f_tile is None else f_tile)
    assert F % TF == 0 and (TF == F or (TF * S) % 128 == 0), (TF, F, S)
    NT = F // TF
    M = TF * S                              # lane-dense output width per tile
    Mp = (TF + 2 * pad) * S                 # tile + halo rows, flattened
    W = Mp + 2 * pad                        # + pad-lane guards on both sides

    x = x_nchw.astype(jnp.float32)

    # Tile + halo slabs (zero-padded at the feat edges) built by one XLA
    # pad + gather; halos ride the auto-pipelined BlockSpec, so the kernel has
    # no manual DMAs, no landing buffers and no in-kernel buffer assembly.
    xp = jnp.pad(x, ((0, 0), (0, 0), (pad, pad), (0, 0)))        # (B,C,F+2p,S)
    row_idx = (jnp.arange(NT)[:, None] * TF
               + jnp.arange(TF + 2 * pad)[None, :])               # (NT, TF+2p)
    slabs = xp[:, :, row_idx, :]                                   # (B,C,NT,TF+2p,S)
    slabs = jnp.moveaxis(slabs, 2, 1).reshape(B, NT, C, Mp)
    slabs = jnp.pad(slabs, ((0, 0), (0, 0), (0, 0), (pad, pad)))   # lane guards

    dw_k = dw_w.reshape(C, K * K).astype(jnp.float32)
    dwb_k = dw_b.reshape(C, 1).astype(jnp.float32)
    lnw_k = ln_w.reshape(C, 1).astype(jnp.float32)
    lnb_k = ln_b.reshape(C, 1).astype(jnp.float32)
    w1_k = w1.reshape(Cexp, C).astype(jnp.bfloat16)    # MXU operands in bf16
    b1_k = b1.reshape(Cexp, 1).astype(jnp.float32)
    w2_k = w2.reshape(C, Cexp).astype(jnp.bfloat16)
    b2_k = b2.reshape(C, 1).astype(jnp.float32)

    kernel = functools.partial(_convnext_kernel, K, S, float(ln_eps), gelu_dtype)

    out_flat = pl.pallas_call(
        kernel,
        out_shape=jax.ShapeDtypeStruct((B, C, F * S), jnp.float32),
        grid_spec=pltpu.PrefetchScalarGridSpec(
            num_scalar_prefetch=0,
            grid=(B, NT),
            in_specs=[
                pl.BlockSpec((None, None, C, W), lambda b, t: (b, t, 0, 0)),
                pl.BlockSpec((C, K * K), lambda b, t: (0, 0)),
                pl.BlockSpec((C, 1), lambda b, t: (0, 0)),
                pl.BlockSpec((C, 1), lambda b, t: (0, 0)),
                pl.BlockSpec((C, 1), lambda b, t: (0, 0)),
                pl.BlockSpec((Cexp, C), lambda b, t: (0, 0)),
                pl.BlockSpec((Cexp, 1), lambda b, t: (0, 0)),
                pl.BlockSpec((C, Cexp), lambda b, t: (0, 0)),
                pl.BlockSpec((C, 1), lambda b, t: (0, 0)),
            ],
            out_specs=pl.BlockSpec((None, C, M), lambda b, t: (b, 0, t)),
        ),
        compiler_params=pltpu.CompilerParams(
            # No accumulator across grid steps and disjoint output blocks:
            # both axes are independent (megacore / v7x friendly).
            dimension_semantics=("parallel", "parallel"),
            vmem_limit_bytes=vmem_limit),
    )(slabs, dw_k, dwb_k, lnw_k, lnb_k, w1_k, b1_k, w2_k, b2_k)

    return out_flat.reshape(B, C, F, S)


# --------------------------------------------------------------------------
# Reference + test harness.
# --------------------------------------------------------------------------
def init_params(key, C, expansion, K):
    """Deterministic synthetic weights in PyTorch layouts."""
    Cexp = C * expansion
    ks = jax.random.split(key, 8)
    dw_w = jax.random.normal(ks[0], (C, 1, K, K), jnp.float32) / math.sqrt(K * K)
    dw_b = 0.1 * jax.random.normal(ks[1], (C,), jnp.float32)
    ln_w = 1.0 + 0.1 * jax.random.normal(ks[2], (C,), jnp.float32)
    ln_b = 0.1 * jax.random.normal(ks[3], (C,), jnp.float32)
    w1 = jax.random.normal(ks[4], (Cexp, C), jnp.float32) / math.sqrt(C)
    b1 = 0.1 * jax.random.normal(ks[5], (Cexp,), jnp.float32)
    w2 = jax.random.normal(ks[6], (C, Cexp), jnp.float32) / math.sqrt(Cexp)
    b2 = 0.1 * jax.random.normal(ks[7], (C,), jnp.float32)
    return (dw_w, dw_b, ln_w, ln_b, w1, b1, w2, b2)


def reference(x, params, K, ln_eps):
    """Pure-JAX (XLA) reproduction of the PyTorch forward, NCHW, f32."""
    dw_w, dw_b, ln_w, ln_b, w1, b1, w2, b2 = params
    C = x.shape[1]
    pad = K // 2
    y = lax.conv_general_dilated(
        x, dw_w, window_strides=(1, 1),
        padding=[(pad, pad), (pad, pad)],
        dimension_numbers=("NCHW", "OIHW", "NCHW"),
        feature_group_count=C, precision=lax.Precision.HIGHEST)
    y = y + dw_b[None, :, None, None]
    mean = jnp.mean(y, axis=1, keepdims=True)
    var = jnp.mean((y - mean) ** 2, axis=1, keepdims=True)
    y = (y - mean) * lax.rsqrt(var + ln_eps)
    y = y * ln_w[None, :, None, None] + ln_b[None, :, None, None]
    h = jnp.einsum("bcfs,ec->befs", y, w1,
                   precision=lax.Precision.HIGHEST) + b1[None, :, None, None]
    h = jax.nn.gelu(h, approximate=False)
    z = jnp.einsum("befs,ce->bcfs", h, w2,
                   precision=lax.Precision.HIGHEST) + b2[None, :, None, None]
    return z + x


if __name__ == "__main__":
    B, C, F, S = 2, 8, 16, 16            # [batch, channel, feat_dim, seq_len]
    expansion, K, ln_eps = 4, 7, 1e-12

    key = jax.random.PRNGKey(0)
    kx, kp = jax.random.split(key)
    x = jax.random.normal(kx, (B, C, F, S), jnp.float32)
    params = init_params(kp, C, expansion, K)

    ref = reference(x, params, K, ln_eps)

    # Run once with the auto-selected tile (whole feat dim at this size) and
    # once with an explicit 2-way feat tiling to exercise the overlapping-slab
    # halo path.  bf16 MXU operands (+ bf16 GELU on v6e/v7x) -> loose-ish
    # max tolerance, tight mean tolerance.
    for f_tile in (None, 8):
        out = convnext_layer(x, params, kernel_size=K, ln_eps=ln_eps,
                             f_tile=f_tile)
        out = jax.block_until_ready(out)
        assert out.shape == x.shape and out.dtype == jnp.float32
        diff = jnp.abs(out - ref)
        err_max = float(jnp.max(diff))
        err_mean = float(jnp.mean(diff))
        if err_max > 8e-2 or err_mean > 2e-2:
            raise AssertionError(
                f"kernel/reference mismatch (f_tile={f_tile}): "
                f"max|diff|={err_max}, mean|diff|={err_mean}")
    print("KERNEL_OK")
</pallas_src>

<mosaic_0001>
module attributes {stable_mosaic.version = 11 : i64} {
  func.func @_convnext_kernel(%arg0: i32, %arg1: i32, %arg2: memref<1x1x8x358xf32, #tpu.memory_space<vmem>>, %arg3: memref<8x49xf32, #tpu.memory_space<vmem>>, %arg4: memref<8x1xf32, #tpu.memory_space<vmem>>, %arg5: memref<8x1xf32, #tpu.memory_space<vmem>>, %arg6: memref<8x1xf32, #tpu.memory_space<vmem>>, %arg7: memref<32x8xbf16, #tpu.memory_space<vmem>>, %arg8: memref<32x1xf32, #tpu.memory_space<vmem>>, %arg9: memref<8x32xbf16, #tpu.memory_space<vmem>>, %arg10: memref<8x1xf32, #tpu.memory_space<vmem>>, %arg11: memref<1x8x256xf32, #tpu.memory_space<vmem>>) attributes {dimension_semantics = [#tpu.dimension_semantics<parallel>, #tpu.dimension_semantics<parallel>], iteration_bounds = array<i64: 2, 1>, scalar_prefetch = 0 : i64, scratch_operands = 0 : i64, tpu.core_type = #tpu.core_type<tc>, window_params = [{transform_indices = @transform_0, window_bounds = array<i64: 1, 1, 8, 358>}, {pipeline_mode = #tpu.pipeline_mode<synchronous>, transform_indices = @transform_1, window_bounds = array<i64: 8, 49>}, {pipeline_mode = #tpu.pipeline_mode<synchronous>, transform_indices = @transform_2, window_bounds = array<i64: 8, 1>}, {pipeline_mode = #tpu.pipeline_mode<synchronous>, transform_indices = @transform_3, window_bounds = array<i64: 8, 1>}, {pipeline_mode = #tpu.pipeline_mode<synchronous>, transform_indices = @transform_4, window_bounds = array<i64: 8, 1>}, {pipeline_mode = #tpu.pipeline_mode<synchronous>, transform_indices = @transform_5, window_bounds = array<i64: 32, 8>}, {pipeline_mode = #tpu.pipeline_mode<synchronous>, transform_indices = @transform_6, window_bounds = array<i64: 32, 1>}, {pipeline_mode = #tpu.pipeline_mode<synchronous>, transform_indices = @transform_7, window_bounds = array<i64: 8, 32>}, {pipeline_mode = #tpu.pipeline_mode<synchronous>, transform_indices = @transform_8, window_bounds = array<i64: 8, 1>}, {transform_indices = @transform_9, window_bounds = array<i64: 1, 8, 256>}]} {
    %c0 = arith.constant 0 : index
    %c0_0 = arith.constant 0 : index
    %c0_1 = arith.constant 0 : index
    %c0_2 = arith.constant 0 : index
    %0 = vector.load %arg2[%c0, %c0_0, %c0_1, %c0_2] : memref<1x1x8x358xf32, #tpu.memory_space<vmem>>, vector<1x1x8x262xf32>
    %1 = vector.shape_cast %0 : vector<1x1x8x262xf32> to vector<8x262xf32>
    %c0_3 = arith.constant 0 : index
    %c0_4 = arith.constant 0 : index
    %c0_5 = arith.constant 0 : index
    %c16 = arith.constant 16 : index
    %2 = vector.load %arg2[%c0_3, %c0_4, %c0_5, %c16] : memref<1x1x8x358xf32, #tpu.memory_space<vmem>>, vector<1x1x8x262xf32>
    %3 = vector.shape_cast %2 : vector<1x1x8x262xf32> to vector<8x262xf32>
    %c0_6 = arith.constant 0 : index
    %c0_7 = arith.constant 0 : index
    %c0_8 = arith.constant 0 : index
    %c32 = arith.constant 32 : index
    %4 = vector.load %arg2[%c0_6, %c0_7, %c0_8, %c32] : memref<1x1x8x358xf32, #tpu.memory_space<vmem>>, vector<1x1x8x262xf32>
    %5 = vector.shape_cast %4 : vector<1x1x8x262xf32> to vector<8x262xf32>
    %c0_9 = arith.constant 0 : index
    %c0_10 = arith.constant 0 : index
    %c0_11 = arith.constant 0 : index
    %c48 = arith.constant 48 : index
    %6 = vector.load %arg2[%c0_9, %c0_10, %c0_11, %c48] : memref<1x1x8x358xf32, #tpu.memory_space<vmem>>, vector<1x1x8x262xf32>
    %7 = vector.shape_cast %6 : vector<1x1x8x262xf32> to vector<8x262xf32>
    %c0_12 = arith.constant 0 : index
    %c0_13 = arith.constant 0 : index
    %c0_14 = arith.constant 0 : index
    %c64 = arith.constant 64 : index
    %8 = vector.load %arg2[%c0_12, %c0_13, %c0_14, %c64] : memref<1x1x8x358xf32, #tpu.memory_space<vmem>>, vector<1x1x8x262xf32>
    %9 = vector.shape_cast %8 : vector<1x1x8x262xf32> to vector<8x262xf32>
    %c0_15 = arith.constant 0 : index
    %c0_16 = arith.constant 0 : index
    %c0_17 = arith.constant 0 : index
    %c80 = arith.constant 80 : index
    %10 = vector.load %arg2[%c0_15, %c0_16, %c0_17, %c80] : memref<1x1x8x358xf32, #tpu.memory_space<vmem>>, vector<1x1x8x262xf32>
    %11 = vector.shape_cast %10 : vector<1x1x8x262xf32> to vector<8x262xf32>
    %c0_18 = arith.constant 0 : index
    %c0_19 = arith.constant 0 : index
    %c0_20 = arith.constant 0 : index
    %c96 = arith.constant 96 : index
    %12 = vector.load %arg2[%c0_18, %c0_19, %c0_20, %c96] : memref<1x1x8x358xf32, #tpu.memory_space<vmem>>, vector<1x1x8x262xf32>
    %13 = vector.shape_cast %12 : vector<1x1x8x262xf32> to vector<8x262xf32>
    %14 = tpu.iota {dimensions = array<i32: 1>} : vector<1x256xi32>
    %c16_i32 = arith.constant 16 : i32
    %c0_i32 = arith.constant 0 : i32
    %15 = arith.cmpi eq, %c16_i32, %c0_i32 : i32
    %c1_i32 = arith.constant 1 : i32
    %16 = arith.select %15, %c1_i32, %c16_i32 : i32
    %17 = vector.broadcast %16 : i32 to vector<1x256xi32>
    %18 = arith.remsi %14, %17 : vector<1x256xi32>
    %c0_i32_21 = arith.constant 0 : i32
    %19 = vector.broadcast %c0_i32_21 : i32 to vector<1x256xi32>
    %20 = arith.cmpi ne, %18, %19 : vector<1x256xi32>
    %c0_i32_22 = arith.constant 0 : i32
    %21 = vector.broadcast %c0_i32_22 : i32 to vector<1x256xi32>
    %22 = arith.cmpi slt, %18, %21 : vector<1x256xi32>
    %c0_i32_23 = arith.constant 0 : i32
    %23 = arith.cmpi slt, %16, %c0_i32_23 : i32
    %24 = vector.broadcast %23 : i1 to vector<1x256xi1>
    %25 = vector.broadcast %24 : vector<1x256xi1> to vector<1x256xi1>
    %26 = arith.xori %22, %25 : vector<1x256xi1>
    %27 = arith.andi %26, %20 : vector<1x256xi1>
    %28 = vector.broadcast %16 : i32 to vector<1x256xi32>
    %29 = arith.addi %18, %28 : vector<1x256xi32>
    %30 = arith.select %27, %29, %18 : vector<1x256xi1>, vector<1x256xi32>
    %c0_24 = arith.constant 0 : index
    %c0_25 = arith.constant 0 : index
    %31 = vector.load %arg4[%c0_24, %c0_25] : memref<8x1xf32, #tpu.memory_space<vmem>>, vector<8x1xf32>
    %32 = vector.shape_cast %31 : vector<8x1xf32> to vector<8x1xf32>
    %33 = vector.broadcast %32 : vector<8x1xf32> to vector<8x256xf32>
    %c0_26 = arith.constant 0 : index
    %c0_27 = arith.constant 0 : index
    %34 = vector.load %arg3[%c0_26, %c0_27] : memref<8x49xf32, #tpu.memory_space<vmem>>, vector<8x1xf32>
    %35 = vector.broadcast %34 : vector<8x1xf32> to vector<8x262xf32>
    %36 = arith.mulf %1, %35 : vector<8x262xf32>
    %c0_28 = arith.constant 0 : index
    %c7 = arith.constant 7 : index
    %37 = vector.load %arg3[%c0_28, %c7] : memref<8x49xf32, #tpu.memory_space<vmem>>, vector<8x1xf32>
    %38 = vector.broadcast %37 : vector<8x1xf32> to vector<8x262xf32>
    %39 = arith.mulf %3, %38 : vector<8x262xf32>
    %40 = arith.addf %36, %39 : vector<8x262xf32>
    %c0_29 = arith.constant 0 : index
    %c14 = arith.constant 14 : index
    %41 = vector.load %arg3[%c0_29, %c14] : memref<8x49xf32, #tpu.memory_space<vmem>>, vector<8x1xf32>
    %42 = vector.broadcast %41 : vector<8x1xf32> to vector<8x262xf32>
    %43 = arith.mulf %5, %42 : vector<8x262xf32>
    %44 = arith.addf %40, %43 : vector<8x262xf32>
    %c0_30 = arith.constant 0 : index
    %c21 = arith.constant 21 : index
    %45 = vector.load %arg3[%c0_30, %c21] : memref<8x49xf32, #tpu.memory_space<vmem>>, vector<8x1xf32>
    %46 = vector.broadcast %45 : vector<8x1xf32> to vector<8x262xf32>
    %47 = arith.mulf %7, %46 : vector<8x262xf32>
    %48 = arith.addf %44, %47 : vector<8x262xf32>
    %c0_31 = arith.constant 0 : index
    %c28 = arith.constant 28 : index
    %49 = vector.load %arg3[%c0_31, %c28] : memref<8x49xf32, #tpu.memory_space<vmem>>, vector<8x1xf32>
    %50 = vector.broadcast %49 : vector<8x1xf32> to vector<8x262xf32>
    %51 = arith.mulf %9, %50 : vector<8x262xf32>
    %52 = arith.addf %48, %51 : vector<8x262xf32>
    %c0_32 = arith.constant 0 : index
    %c35 = arith.constant 35 : index
    %53 = vector.load %arg3[%c0_32, %c35] : memref<8x49xf32, #tpu.memory_space<vmem>>, vector<8x1xf32>
    %54 = vector.broadcast %53 : vector<8x1xf32> to vector<8x262xf32>
    %55 = arith.mulf %11, %54 : vector<8x262xf32>
    %56 = arith.addf %52, %55 : vector<8x262xf32>
    %c0_33 = arith.constant 0 : index
    %c42 = arith.constant 42 : index
    %57 = vector.load %arg3[%c0_33, %c42] : memref<8x49xf32, #tpu.memory_space<vmem>>, vector<8x1xf32>
    %58 = vector.broadcast %57 : vector<8x1xf32> to vector<8x262xf32>
    %59 = arith.mulf %13, %58 : vector<8x262xf32>
    %60 = arith.addf %56, %59 : vector<8x262xf32>
    %61 = vector.extract_strided_slice %60 {offsets = [0, 0], sizes = [8, 256], strides = [1, 1]} : vector<8x262xf32> to vector<8x256xf32>
    %c-3_i32 = arith.constant -3 : i32
    %62 = vector.broadcast %c-3_i32 : i32 to vector<1x256xi32>
    %63 = arith.addi %30, %62 : vector<1x256xi32>
    %c0_i32_34 = arith.constant 0 : i32
    %64 = vector.broadcast %c0_i32_34 : i32 to vector<1x256xi32>
    %65 = arith.cmpi sge, %63, %64 : vector<1x256xi32>
    %c-3_i32_35 = arith.constant -3 : i32
    %66 = vector.broadcast %c-3_i32_35 : i32 to vector<1x256xi32>
    %67 = arith.addi %30, %66 : vector<1x256xi32>
    %c16_i32_36 = arith.constant 16 : i32
    %68 = vector.broadcast %c16_i32_36 : i32 to vector<1x256xi32>
    %69 = arith.cmpi slt, %67, %68 : vector<1x256xi32>
    %70 = arith.andi %65, %69 : vector<1x256xi1>
    %cst = arith.constant 0.000000e+00 : f32
    %71 = vector.shape_cast %70 : vector<1x256xi1> to vector<1x256xi1>
    %72 = vector.broadcast %71 : vector<1x256xi1> to vector<8x256xi1>
    %73 = vector.broadcast %cst : f32 to vector<8x256xf32>
    %74 = arith.select %72, %61, %73 : vector<8x256xi1>, vector<8x256xf32>
    %75 = arith.addf %33, %74 : vector<8x256xf32>
    %c0_37 = arith.constant 0 : index
    %c1 = arith.constant 1 : index
    %76 = vector.load %arg3[%c0_37, %c1] : memref<8x49xf32, #tpu.memory_space<vmem>>, vector<8x1xf32>
    %77 = vector.broadcast %76 : vector<8x1xf32> to vector<8x262xf32>
    %78 = arith.mulf %1, %77 : vector<8x262xf32>
    %c0_38 = arith.constant 0 : index
    %c8 = arith.constant 8 : index
    %79 = vector.load %arg3[%c0_38, %c8] : memref<8x49xf32, #tpu.memory_space<vmem>>, vector<8x1xf32>
    %80 = vector.broadcast %79 : vector<8x1xf32> to vector<8x262xf32>
    %81 = arith.mulf %3, %80 : vector<8x262xf32>
    %82 = arith.addf %78, %81 : vector<8x262xf32>
    %c0_39 = arith.constant 0 : index
    %c15 = arith.constant 15 : index
    %83 = vector.load %arg3[%c0_39, %c15] : memref<8x49xf32, #tpu.memory_space<vmem>>, vector<8x1xf32>
    %84 = vector.broadcast %83 : vector<8x1xf32> to vector<8x262xf32>
    %85 = arith.mulf %5, %84 : vector<8x262xf32>
    %86 = arith.addf %82, %85 : vector<8x262xf32>
    %c0_40 = arith.constant 0 : index
    %c22 = arith.constant 22 : index
    %87 = vector.load %arg3[%c0_40, %c22] : memref<8x49xf32, #tpu.memory_space<vmem>>, vector<8x1xf32>
    %88 = vector.broadcast %87 : vector<8x1xf32> to vector<8x262xf32>
    %89 = arith.mulf %7, %88 : vector<8x262xf32>
    %90 = arith.addf %86, %89 : vector<8x262xf32>
    %c0_41 = arith.constant 0 : index
    %c29 = arith.constant 29 : index
    %91 = vector.load %arg3[%c0_41, %c29] : memref<8x49xf32, #tpu.memory_space<vmem>>, vector<8x1xf32>
    %92 = vector.broadcast %91 : vector<8x1xf32> to vector<8x262xf32>
    %93 = arith.mulf %9, %92 : vector<8x262xf32>
    %94 = arith.addf %90, %93 : vector<8x262xf32>
    %c0_42 = arith.constant 0 : index
    %c36 = arith.constant 36 : index
    %95 = vector.load %arg3[%c0_42, %c36] : memref<8x49xf32, #tpu.memory_space<vmem>>, vector<8x1xf32>
    %96 = vector.broadcast %95 : vector<8x1xf32> to vector<8x262xf32>
    %97 = arith.mulf %11, %96 : vector<8x262xf32>
    %98 = arith.addf %94, %97 : vector<8x262xf32>
    %c0_43 = arith.constant 0 : index
    %c43 = arith.constant 43 : index
    %99 = vector.load %arg3[%c0_43, %c43] : memref<8x49xf32, #tpu.memory_space<vmem>>, vector<8x1xf32>
    %100 = vector.broadcast %99 : vector<8x1xf32> to vector<8x262xf32>
    %101 = arith.mulf %13, %100 : vector<8x262xf32>
    %102 = arith.addf %98, %101 : vector<8x262xf32>
    %103 = vector.extract_strided_slice %102 {offsets = [0, 1], sizes = [8, 256], strides = [1, 1]} : vector<8x262xf32> to vector<8x256xf32>
    %c-2_i32 = arith.constant -2 : i32
    %104 = vector.broadcast %c-2_i32 : i32 to vector<1x256xi32>
    %105 = arith.addi %30, %104 : vector<1x256xi32>
    %c0_i32_44 = arith.constant 0 : i32
    %106 = vector.broadcast %c0_i32_44 : i32 to vector<1x256xi32>
    %107 = arith.cmpi sge, %105, %106 : vector<1x256xi32>
    %c-2_i32_45 = arith.constant -2 : i32
    %108 = vector.broadcast %c-2_i32_45 : i32 to vector<1x256xi32>
    %109 = arith.addi %30, %108 : vector<1x256xi32>
    %c16_i32_46 = arith.constant 16 : i32
    %110 = vector.broadcast %c16_i32_46 : i32 to vector<1x256xi32>
    %111 = arith.cmpi slt, %109, %110 : vector<1x256xi32>
    %112 = arith.andi %107, %111 : vector<1x256xi1>
    %cst_47 = arith.constant 0.000000e+00 : f32
    %113 = vector.shape_cast %112 : vector<1x256xi1> to vector<1x256xi1>
    %114 = vector.broadcast %113 : vector<1x256xi1> to vector<8x256xi1>
    %115 = vector.broadcast %cst_47 : f32 to vector<8x256xf32>
    %116 = arith.select %114, %103, %115 : vector<8x256xi1>, vector<8x256xf32>
    %117 = arith.addf %75, %116 : vector<8x256xf32>
    %c0_48 = arith.constant 0 : index
    %c2 = arith.constant 2 : index
    %118 = vector.load %arg3[%c0_48, %c2] : memref<8x49xf32, #tpu.memory_space<vmem>>, vector<8x1xf32>
    %119 = vector.broadcast %118 : vector<8x1xf32> to vector<8x262xf32>
    %120 = arith.mulf %1, %119 : vector<8x262xf32>
    %c0_49 = arith.constant 0 : index
    %c9 = arith.constant 9 : index
    %121 = vector.load %arg3[%c0_49, %c9] : memref<8x49xf32, #tpu.memory_space<vmem>>, vector<8x1xf32>
    %122 = vector.broadcast %121 : vector<8x1xf32> to vector<8x262xf32>
    %123 = arith.mulf %3, %122 : vector<8x262xf32>
    %124 = arith.addf %120, %123 : vector<8x262xf32>
    %c0_50 = arith.constant 0 : index
    %c16_51 = arith.constant 16 : index
    %125 = vector.load %arg3[%c0_50, %c16_51] : memref<8x49xf32, #tpu.memory_space<vmem>>, vector<8x1xf32>
    %126 = vector.broadcast %125 : vector<8x1xf32> to vector<8x262xf32>
    %127 = arith.mulf %5, %126 : vector<8x262xf32>
    %128 = arith.addf %124, %127 : vector<8x262xf32>
    %c0_52 = arith.constant 0 : index
    %c23 = arith.constant 23 : index
    %129 = vector.load %arg3[%c0_52, %c23] : memref<8x49xf32, #tpu.memory_space<vmem>>, vector<8x1xf32>
    %130 = vector.broadcast %129 : vector<8x1xf32> to vector<8x262xf32>
    %131 = arith.mulf %7, %130 : vector<8x262xf32>
    %132 = arith.addf %128, %131 : vector<8x262xf32>
    %c0_53 = arith.constant 0 : index
    %c30 = arith.constant 30 : index
    %133 = vector.load %arg3[%c0_53, %c30] : memref<8x49xf32, #tpu.memory_space<vmem>>, vector<8x1xf32>
    %134 = vector.broadcast %133 : vector<8x1xf32> to vector<8x262xf32>
    %135 = arith.mulf %9, %134 : vector<8x262xf32>
    %136 = arith.addf %132, %135 : vector<8x262xf32>
    %c0_54 = arith.constant 0 : index
    %c37 = arith.constant 37 : index
    %137 = vector.load %arg3[%c0_54, %c37] : memref<8x49xf32, #tpu.memory_space<vmem>>, vector<8x1xf32>
    %138 = vector.broadcast %137 : vector<8x1xf32> to vector<8x262xf32>
    %139 = arith.mulf %11, %138 : vector<8x262xf32>
    %140 = arith.addf %136, %139 : vector<8x262xf32>
    %c0_55 = arith.constant 0 : index
    %c44 = arith.constant 44 : index
    %141 = vector.load %arg3[%c0_55, %c44] : memref<8x49xf32, #tpu.memory_space<vmem>>, vector<8x1xf32>
    %142 = vector.broadcast %141 : vector<8x1xf32> to vector<8x262xf32>
    %143 = arith.mulf %13, %142 : vector<8x262xf32>
    %144 = arith.addf %140, %143 : vector<8x262xf32>
    %145 = vector.extract_strided_slice %144 {offsets = [0, 2], sizes = [8, 256], strides = [1, 1]} : vector<8x262xf32> to vector<8x256xf32>
    %c-1_i32 = arith.constant -1 : i32
    %146 = vector.broadcast %c-1_i32 : i32 to vector<1x256xi32>
    %147 = arith.addi %30, %146 : vector<1x256xi32>
    %c0_i32_56 = arith.constant 0 : i32
    %148 = vector.broadcast %c0_i32_56 : i32 to vector<1x256xi32>
    %149 = arith.cmpi sge, %147, %148 : vector<1x256xi32>
    %c-1_i32_57 = arith.constant -1 : i32
    %150 = vector.broadcast %c-1_i32_57 : i32 to vector<1x256xi32>
    %151 = arith.addi %30, %150 : vector<1x256xi32>
    %c16_i32_58 = arith.constant 16 : i32
    %152 = vector.broadcast %c16_i32_58 : i32 to vector<1x256xi32>
    %153 = arith.cmpi slt, %151, %152 : vector<1x256xi32>
    %154 = arith.andi %149, %153 : vector<1x256xi1>
    %cst_59 = arith.constant 0.000000e+00 : f32
    %155 = vector.shape_cast %154 : vector<1x256xi1> to vector<1x256xi1>
    %156 = vector.broadcast %155 : vector<1x256xi1> to vector<8x256xi1>
    %157 = vector.broadcast %cst_59 : f32 to vector<8x256xf32>
    %158 = arith.select %156, %145, %157 : vector<8x256xi1>, vector<8x256xf32>
    %159 = arith.addf %117, %158 : vector<8x256xf32>
    %c0_60 = arith.constant 0 : index
    %c3 = arith.constant 3 : index
    %160 = vector.load %arg3[%c0_60, %c3] : memref<8x49xf32, #tpu.memory_space<vmem>>, vector<8x1xf32>
    %161 = vector.broadcast %160 : vector<8x1xf32> to vector<8x262xf32>
    %162 = arith.mulf %1, %161 : vector<8x262xf32>
    %c0_61 = arith.constant 0 : index
    %c10 = arith.constant 10 : index
    %163 = vector.load %arg3[%c0_61, %c10] : memref<8x49xf32, #tpu.memory_space<vmem>>, vector<8x1xf32>
    %164 = vector.broadcast %163 : vector<8x1xf32> to vector<8x262xf32>
    %165 = arith.mulf %3, %164 : vector<8x262xf32>
    %166 = arith.addf %162, %165 : vector<8x262xf32>
    %c0_62 = arith.constant 0 : index
    %c17 = arith.constant 17 : index
    %167 = vector.load %arg3[%c0_62, %c17] : memref<8x49xf32, #tpu.memory_space<vmem>>, vector<8x1xf32>
    %168 = vector.broadcast %167 : vector<8x1xf32> to vector<8x262xf32>
    %169 = arith.mulf %5, %168 : vector<8x262xf32>
    %170 = arith.addf %166, %169 : vector<8x262xf32>
    %c0_63 = arith.constant 0 : index
    %c24 = arith.constant 24 : index
    %171 = vector.load %arg3[%c0_63, %c24] : memref<8x49xf32, #tpu.memory_space<vmem>>, vector<8x1xf32>
    %172 = vector.broadcast %171 : vector<8x1xf32> to vector<8x262xf32>
    %173 = arith.mulf %7, %172 : vector<8x262xf32>
    %174 = arith.addf %170, %173 : vector<8x262xf32>
    %c0_64 = arith.constant 0 : index
    %c31 = arith.constant 31 : index
    %175 = vector.load %arg3[%c0_64, %c31] : memref<8x49xf32, #tpu.memory_space<vmem>>, vector<8x1xf32>
    %176 = vector.broadcast %175 : vector<8x1xf32> to vector<8x262xf32>
    %177 = arith.mulf %9, %176 : vector<8x262xf32>
    %178 = arith.addf %174, %177 : vector<8x262xf32>
    %c0_65 = arith.constant 0 : index
    %c38 = arith.constant 38 : index
    %179 = vector.load %arg3[%c0_65, %c38] : memref<8x49xf32, #tpu.memory_space<vmem>>, vector<8x1xf32>
    %180 = vector.broadcast %179 : vector<8x1xf32> to vector<8x262xf32>
    %181 = arith.mulf %11, %180 : vector<8x262xf32>
    %182 = arith.addf %178, %181 : vector<8x262xf32>
    %c0_66 = arith.constant 0 : index
    %c45 = arith.constant 45 : index
    %183 = vector.load %arg3[%c0_66, %c45] : memref<8x49xf32, #tpu.memory_space<vmem>>, vector<8x1xf32>
    %184 = vector.broadcast %183 : vector<8x1xf32> to vector<8x262xf32>
    %185 = arith.mulf %13, %184 : vector<8x262xf32>
    %186 = arith.addf %182, %185 : vector<8x262xf32>
    %187 = vector.extract_strided_slice %186 {offsets = [0, 3], sizes = [8, 256], strides = [1, 1]} : vector<8x262xf32> to vector<8x256xf32>
    %188 = arith.addf %159, %187 : vector<8x256xf32>
    %c0_67 = arith.constant 0 : index
    %c4 = arith.constant 4 : index
    %189 = vector.load %arg3[%c0_67, %c4] : memref<8x49xf32, #tpu.memory_space<vmem>>, vector<8x1xf32>
    %190 = vector.broadcast %189 : vector<8x1xf32> to vector<8x262xf32>
    %191 = arith.mulf %1, %190 : vector<8x262xf32>
    %c0_68 = arith.constant 0 : index
    %c11 = arith.constant 11 : index
    %192 = vector.load %arg3[%c0_68, %c11] : memref<8x49xf32, #tpu.memory_space<vmem>>, vector<8x1xf32>
    %193 = vector.broadcast %192 : vector<8x1xf32> to vector<8x262xf32>
    %194 = arith.mulf %3, %193 : vector<8x262xf32>
    %195 = arith.addf %191, %194 : vector<8x262xf32>
    %c0_69 = arith.constant 0 : index
    %c18 = arith.constant 18 : index
    %196 = vector.load %arg3[%c0_69, %c18] : memref<8x49xf32, #tpu.memory_space<vmem>>, vector<8x1xf32>
    %197 = vector.broadcast %196 : vector<8x1xf32> to vector<8x262xf32>
    %198 = arith.mulf %5, %197 : vector<8x262xf32>
    %199 = arith.addf %195, %198 : vector<8x262xf32>
    %c0_70 = arith.constant 0 : index
    %c25 = arith.constant 25 : index
    %200 = vector.load %arg3[%c0_70, %c25] : memref<8x49xf32, #tpu.memory_space<vmem>>, vector<8x1xf32>
    %201 = vector.broadcast %200 : vector<8x1xf32> to vector<8x262xf32>
    %202 = arith.mulf %7, %201 : vector<8x262xf32>
    %203 = arith.addf %199, %202 : vector<8x262xf32>
    %c0_71 = arith.constant 0 : index
    %c32_72 = arith.constant 32 : index
    %204 = vector.load %arg3[%c0_71, %c32_72] : memref<8x49xf32, #tpu.memory_space<vmem>>, vector<8x1xf32>
    %205 = vector.broadcast %204 : vector<8x1xf32> to vector<8x262xf32>
    %206 = arith.mulf %9, %205 : vector<8x262xf32>
    %207 = arith.addf %203, %206 : vector<8x262xf32>
    %c0_73 = arith.constant 0 : index
    %c39 = arith.constant 39 : index
    %208 = vector.load %arg3[%c0_73, %c39] : memref<8x49xf32, #tpu.memory_space<vmem>>, vector<8x1xf32>
    %209 = vector.broadcast %208 : vector<8x1xf32> to vector<8x262xf32>
    %210 = arith.mulf %11, %209 : vector<8x262xf32>
    %211 = arith.addf %207, %210 : vector<8x262xf32>
    %c0_74 = arith.constant 0 : index
    %c46 = arith.constant 46 : index
    %212 = vector.load %arg3[%c0_74, %c46] : memref<8x49xf32, #tpu.memory_space<vmem>>, vector<8x1xf32>
    %213 = vector.broadcast %212 : vector<8x1xf32> to vector<8x262xf32>
    %214 = arith.mulf %13, %213 : vector<8x262xf32>
    %215 = arith.addf %211, %214 : vector<8x262xf32>
    %216 = vector.extract_strided_slice %215 {offsets = [0, 4], sizes = [8, 256], strides = [1, 1]} : vector<8x262xf32> to vector<8x256xf32>
    %c1_i32_75 = arith.constant 1 : i32
    %217 = vector.broadcast %c1_i32_75 : i32 to vector<1x256xi32>
    %218 = arith.addi %30, %217 : vector<1x256xi32>
    %c0_i32_76 = arith.constant 0 : i32
    %219 = vector.broadcast %c0_i32_76 : i32 to vector<1x256xi32>
    %220 = arith.cmpi sge, %218, %219 : vector<1x256xi32>
    %c1_i32_77 = arith.constant 1 : i32
    %221 = vector.broadcast %c1_i32_77 : i32 to vector<1x256xi32>
    %222 = arith.addi %30, %221 : vector<1x256xi32>
    %c16_i32_78 = arith.constant 16 : i32
    %223 = vector.broadcast %c16_i32_78 : i32 to vector<1x256xi32>
    %224 = arith.cmpi slt, %222, %223 : vector<1x256xi32>
    %225 = arith.andi %220, %224 : vector<1x256xi1>
    %cst_79 = arith.constant 0.000000e+00 : f32
    %226 = vector.shape_cast %225 : vector<1x256xi1> to vector<1x256xi1>
    %227 = vector.broadcast %226 : vector<1x256xi1> to vector<8x256xi1>
    %228 = vector.broadcast %cst_79 : f32 to vector<8x256xf32>
    %229 = arith.select %227, %216, %228 : vector<8x256xi1>, vector<8x256xf32>
    %230 = arith.addf %188, %229 : vector<8x256xf32>
    %c0_80 = arith.constant 0 : index
    %c5 = arith.constant 5 : index
    %231 = vector.load %arg3[%c0_80, %c5] : memref<8x49xf32, #tpu.memory_space<vmem>>, vector<8x1xf32>
    %232 = vector.broadcast %231 : vector<8x1xf32> to vector<8x262xf32>
    %233 = arith.mulf %1, %232 : vector<8x262xf32>
    %c0_81 = arith.constant 0 : index
    %c12 = arith.constant 12 : index
    %234 = vector.load %arg3[%c0_81, %c12] : memref<8x49xf32, #tpu.memory_space<vmem>>, vector<8x1xf32>
    %235 = vector.broadcast %234 : vector<8x1xf32> to vector<8x262xf32>
    %236 = arith.mulf %3, %235 : vector<8x262xf32>
    %237 = arith.addf %233, %236 : vector<8x262xf32>
    %c0_82 = arith.constant 0 : index
    %c19 = arith.constant 19 : index
    %238 = vector.load %arg3[%c0_82, %c19] : memref<8x49xf32, #tpu.memory_space<vmem>>, vector<8x1xf32>
    %239 = vector.broadcast %238 : vector<8x1xf32> to vector<8x262xf32>
    %240 = arith.mulf %5, %239 : vector<8x262xf32>
    %241 = arith.addf %237, %240 : vector<8x262xf32>
    %c0_83 = arith.constant 0 : index
    %c26 = arith.constant 26 : index
    %242 = vector.load %arg3[%c0_83, %c26] : memref<8x49xf32, #tpu.memory_space<vmem>>, vector<8x1xf32>
    %243 = vector.broadcast %242 : vector<8x1xf32> to vector<8x262xf32>
    %244 = arith.mulf %7, %243 : vector<8x262xf32>
    %245 = arith.addf %241, %244 : vector<8x262xf32>
    %c0_84 = arith.constant 0 : index
    %c33 = arith.constant 33 : index
    %246 = vector.load %arg3[%c0_84, %c33] : memref<8x49xf32, #tpu.memory_space<vmem>>, vector<8x1xf32>
    %247 = vector.broadcast %246 : vector<8x1xf32> to vector<8x262xf32>
    %248 = arith.mulf %9, %247 : vector<8x262xf32>
    %249 = arith.addf %245, %248 : vector<8x262xf32>
    %c0_85 = arith.constant 0 : index
    %c40 = arith.constant 40 : index
    %250 = vector.load %arg3[%c0_85, %c40] : memref<8x49xf32, #tpu.memory_space<vmem>>, vector<8x1xf32>
    %251 = vector.broadcast %250 : vector<8x1xf32> to vector<8x262xf32>
    %252 = arith.mulf %11, %251 : vector<8x262xf32>
    %253 = arith.addf %249, %252 : vector<8x262xf32>
    %c0_86 = arith.constant 0 : index
    %c47 = arith.constant 47 : index
    %254 = vector.load %arg3[%c0_86, %c47] : memref<8x49xf32, #tpu.memory_space<vmem>>, vector<8x1xf32>
    %255 = vector.broadcast %254 : vector<8x1xf32> to vector<8x262xf32>
    %256 = arith.mulf %13, %255 : vector<8x262xf32>
    %257 = arith.addf %253, %256 : vector<8x262xf32>
    %258 = vector.extract_strided_slice %257 {offsets = [0, 5], sizes = [8, 256], strides = [1, 1]} : vector<8x262xf32> to vector<8x256xf32>
    %c2_i32 = arith.constant 2 : i32
    %259 = vector.broadcast %c2_i32 : i32 to vector<1x256xi32>
    %260 = arith.addi %30, %259 : vector<1x256xi32>
    %c0_i32_87 = arith.constant 0 : i32
    %261 = vector.broadcast %c0_i32_87 : i32 to vector<1x256xi32>
    %262 = arith.cmpi sge, %260, %261 : vector<1x256xi32>
    %c2_i32_88 = arith.constant 2 : i32
    %263 = vector.broadcast %c2_i32_88 : i32 to vector<1x256xi32>
    %264 = arith.addi %30, %263 : vector<1x256xi32>
    %c16_i32_89 = arith.constant 16 : i32
    %265 = vector.broadcast %c16_i32_89 : i32 to vector<1x256xi32>
    %266 = arith.cmpi slt, %264, %265 : vector<1x256xi32>
    %267 = arith.andi %262, %266 : vector<1x256xi1>
    %cst_90 = arith.constant 0.000000e+00 : f32
    %268 = vector.shape_cast %267 : vector<1x256xi1> to vector<1x256xi1>
    %269 = vector.broadcast %268 : vector<1x256xi1> to vector<8x256xi1>
    %270 = vector.broadcast %cst_90 : f32 to vector<8x256xf32>
    %271 = arith.select %269, %258, %270 : vector<8x256xi1>, vector<8x256xf32>
    %272 = arith.addf %230, %271 : vector<8x256xf32>
    %c0_91 = arith.constant 0 : index
    %c6 = arith.constant 6 : index
    %273 = vector.load %arg3[%c0_91, %c6] : memref<8x49xf32, #tpu.memory_space<vmem>>, vector<8x1xf32>
    %274 = vector.broadcast %273 : vector<8x1xf32> to vector<8x262xf32>
    %275 = arith.mulf %1, %274 : vector<8x262xf32>
    %c0_92 = arith.constant 0 : index
    %c13 = arith.constant 13 : index
    %276 = vector.load %arg3[%c0_92, %c13] : memref<8x49xf32, #tpu.memory_space<vmem>>, vector<8x1xf32>
    %277 = vector.broadcast %276 : vector<8x1xf32> to vector<8x262xf32>
    %278 = arith.mulf %3, %277 : vector<8x262xf32>
    %279 = arith.addf %275, %278 : vector<8x262xf32>
    %c0_93 = arith.constant 0 : index
    %c20 = arith.constant 20 : index
    %280 = vector.load %arg3[%c0_93, %c20] : memref<8x49xf32, #tpu.memory_space<vmem>>, vector<8x1xf32>
    %281 = vector.broadcast %280 : vector<8x1xf32> to vector<8x262xf32>
    %282 = arith.mulf %5, %281 : vector<8x262xf32>
    %283 = arith.addf %279, %282 : vector<8x262xf32>
    %c0_94 = arith.constant 0 : index
    %c27 = arith.constant 27 : index
    %284 = vector.load %arg3[%c0_94, %c27] : memref<8x49xf32, #tpu.memory_space<vmem>>, vector<8x1xf32>
    %285 = vector.broadcast %284 : vector<8x1xf32> to vector<8x262xf32>
    %286 = arith.mulf %7, %285 : vector<8x262xf32>
    %287 = arith.addf %283, %286 : vector<8x262xf32>
    %c0_95 = arith.constant 0 : index
    %c34 = arith.constant 34 : index
    %288 = vector.load %arg3[%c0_95, %c34] : memref<8x49xf32, #tpu.memory_space<vmem>>, vector<8x1xf32>
    %289 = vector.broadcast %288 : vector<8x1xf32> to vector<8x262xf32>
    %290 = arith.mulf %9, %289 : vector<8x262xf32>
    %291 = arith.addf %287, %290 : vector<8x262xf32>
    %c0_96 = arith.constant 0 : index
    %c41 = arith.constant 41 : index
    %292 = vector.load %arg3[%c0_96, %c41] : memref<8x49xf32, #tpu.memory_space<vmem>>, vector<8x1xf32>
    %293 = vector.broadcast %292 : vector<8x1xf32> to vector<8x262xf32>
    %294 = arith.mulf %11, %293 : vector<8x262xf32>
    %295 = arith.addf %291, %294 : vector<8x262xf32>
    %c0_97 = arith.constant 0 : index
    %c48_98 = arith.constant 48 : index
    %296 = vector.load %arg3[%c0_97, %c48_98] : memref<8x49xf32, #tpu.memory_space<vmem>>, vector<8x1xf32>
    %297 = vector.broadcast %296 : vector<8x1xf32> to vector<8x262xf32>
    %298 = arith.mulf %13, %297 : vector<8x262xf32>
    %299 = arith.addf %295, %298 : vector<8x262xf32>
    %300 = vector.extract_strided_slice %299 {offsets = [0, 6], sizes = [8, 256], strides = [1, 1]} : vector<8x262xf32> to vector<8x256xf32>
    %c3_i32 = arith.constant 3 : i32
    %301 = vector.broadcast %c3_i32 : i32 to vector<1x256xi32>
    %302 = arith.addi %30, %301 : vector<1x256xi32>
    %c0_i32_99 = arith.constant 0 : i32
    %303 = vector.broadcast %c0_i32_99 : i32 to vector<1x256xi32>
    %304 = arith.cmpi sge, %302, %303 : vector<1x256xi32>
    %c3_i32_100 = arith.constant 3 : i32
    %305 = vector.broadcast %c3_i32_100 : i32 to vector<1x256xi32>
    %306 = arith.addi %30, %305 : vector<1x256xi32>
    %c16_i32_101 = arith.constant 16 : i32
    %307 = vector.broadcast %c16_i32_101 : i32 to vector<1x256xi32>
    %308 = arith.cmpi slt, %306, %307 : vector<1x256xi32>
    %309 = arith.andi %304, %308 : vector<1x256xi1>
    %cst_102 = arith.constant 0.000000e+00 : f32
    %310 = vector.shape_cast %309 : vector<1x256xi1> to vector<1x256xi1>
    %311 = vector.broadcast %310 : vector<1x256xi1> to vector<8x256xi1>
    %312 = vector.broadcast %cst_102 : f32 to vector<8x256xf32>
    %313 = arith.select %311, %300, %312 : vector<8x256xi1>, vector<8x256xf32>
    %314 = arith.addf %272, %313 : vector<8x256xf32>
    %cst_103 = arith.constant dense<0.000000e+00> : vector<256xf32>
    %315 = vector.multi_reduction <add>, %314, %cst_103 [0] : vector<8x256xf32> to vector<256xf32>
    %316 = vector.shape_cast %315 : vector<256xf32> to vector<1x256xf32>
    %cst_104 = arith.constant 8.000000e+00 : f32
    %317 = vector.broadcast %cst_104 : f32 to vector<1x256xf32>
    %318 = arith.divf %316, %317 : vector<1x256xf32>
    %319 = vector.broadcast %318 : vector<1x256xf32> to vector<8x256xf32>
    %320 = arith.subf %314, %319 : vector<8x256xf32>
    %321 = arith.mulf %320, %320 : vector<8x256xf32>
    %cst_105 = arith.constant dense<0.000000e+00> : vector<256xf32>
    %322 = vector.multi_reduction <add>, %321, %cst_105 [0] : vector<8x256xf32> to vector<256xf32>
    %323 = vector.shape_cast %322 : vector<256xf32> to vector<1x256xf32>
    %cst_106 = arith.constant 8.000000e+00 : f32
    %324 = vector.broadcast %cst_106 : f32 to vector<1x256xf32>
    %325 = arith.divf %323, %324 : vector<1x256xf32>
    %cst_107 = arith.constant 9.99999996E-13 : f32
    %326 = vector.broadcast %cst_107 : f32 to vector<1x256xf32>
    %327 = arith.addf %325, %326 : vector<1x256xf32>
    %328 = math.rsqrt %327 : vector<1x256xf32>
    %329 = vector.broadcast %328 : vector<1x256xf32> to vector<8x256xf32>
    %330 = arith.mulf %320, %329 : vector<8x256xf32>
    %c0_108 = arith.constant 0 : index
    %c0_109 = arith.constant 0 : index
    %331 = vector.load %arg5[%c0_108, %c0_109] : memref<8x1xf32, #tpu.memory_space<vmem>>, vector<8x1xf32>
    %332 = vector.broadcast %331 : vector<8x1xf32> to vector<8x256xf32>
    %333 = arith.mulf %330, %332 : vector<8x256xf32>
    %c0_110 = arith.constant 0 : index
    %c0_111 = arith.constant 0 : index
    %334 = vector.load %arg6[%c0_110, %c0_111] : memref<8x1xf32, #tpu.memory_space<vmem>>, vector<8x1xf32>
    %335 = vector.broadcast %334 : vector<8x1xf32> to vector<8x256xf32>
    %336 = arith.addf %333, %335 : vector<8x256xf32>
    %c0_112 = arith.constant 0 : index
    %c0_113 = arith.constant 0 : index
    %337 = vector.load %arg7[%c0_112, %c0_113] : memref<32x8xbf16, #tpu.memory_space<vmem>>, vector<32x8xbf16>
    %338 = arith.truncf %336 : vector<8x256xf32> to vector<8x256xbf16>
    %cst_114 = arith.constant dense<0.000000e+00> : vector<32x256xf32>
    %339 = tpu.matmul %337, %338, %cst_114 {dimension_numbers = #tpu.dot_dimension_numbers<[1], [0], [0], [1], [0, 0, 1, 1], [], []>} : vector<32x8xbf16>, vector<8x256xbf16>, vector<32x256xf32> -> vector<32x256xf32>
    %c0_115 = arith.constant 0 : index
    %c0_116 = arith.constant 0 : index
    %340 = vector.load %arg8[%c0_115, %c0_116] : memref<32x1xf32, #tpu.memory_space<vmem>>, vector<32x1xf32>
    %341 = vector.broadcast %340 : vector<32x1xf32> to vector<32x256xf32>
    %342 = arith.addf %339, %341 : vector<32x256xf32>
    %cst_117 = arith.constant 0.707106769 : f32
    %343 = vector.broadcast %cst_117 : f32 to vector<32x256xf32>
    %344 = arith.mulf %342, %343 : vector<32x256xf32>
    %cst_118 = arith.constant 0.000000e+00 : f32
    %345 = vector.broadcast %cst_118 : f32 to vector<32x256xf32>
    %346 = arith.cmpf oge, %344, %345 : vector<32x256xf32>
    %cst_119 = arith.constant 1.000000e+00 : f32
    %cst_120 = arith.constant -1.000000e+00 : f32
    %347 = vector.broadcast %cst_119 : f32 to vector<32x256xf32>
    %348 = vector.broadcast %cst_120 : f32 to vector<32x256xf32>
    %349 = arith.select %346, %347, %348 : vector<32x256xi1>, vector<32x256xf32>
    %350 = math.absf %344 : vector<32x256xf32>
    %cst_121 = arith.constant 0.327591091 : f32
    %351 = vector.broadcast %cst_121 : f32 to vector<32x256xf32>
    %352 = arith.mulf %351, %350 : vector<32x256xf32>
    %cst_122 = arith.constant 1.000000e+00 : f32
    %353 = vector.broadcast %cst_122 : f32 to vector<32x256xf32>
    %354 = arith.addf %353, %352 : vector<32x256xf32>
    %355 = tpu.reciprocal %354 {approx = true} : vector<32x256xf32> -> vector<32x256xf32>
    %356 = arith.mulf %350, %350 : vector<32x256xf32>
    %cst_123 = arith.constant 0.000000e+00 : f32
    %357 = vector.broadcast %cst_123 : f32 to vector<32x256xf32>
    %358 = arith.subf %357, %356 : vector<32x256xf32>
    %359 = math.exp %358 : vector<32x256xf32>
    %cst_124 = arith.constant 1.06140542 : f32
    %360 = vector.broadcast %cst_124 : f32 to vector<32x256xf32>
    %361 = arith.mulf %360, %355 : vector<32x256xf32>
    %cst_125 = arith.constant -1.45315206 : f32
    %362 = vector.broadcast %cst_125 : f32 to vector<32x256xf32>
    %363 = arith.addf %361, %362 : vector<32x256xf32>
    %364 = arith.mulf %363, %355 : vector<32x256xf32>
    %cst_126 = arith.constant 1.42141378 : f32
    %365 = vector.broadcast %cst_126 : f32 to vector<32x256xf32>
    %366 = arith.addf %364, %365 : vector<32x256xf32>
    %367 = arith.mulf %366, %355 : vector<32x256xf32>
    %cst_127 = arith.constant -0.284496725 : f32
    %368 = vector.broadcast %cst_127 : f32 to vector<32x256xf32>
    %369 = arith.addf %367, %368 : vector<32x256xf32>
    %370 = arith.mulf %369, %355 : vector<32x256xf32>
    %cst_128 = arith.constant 0.254829586 : f32
    %371 = vector.broadcast %cst_128 : f32 to vector<32x256xf32>
    %372 = arith.addf %370, %371 : vector<32x256xf32>
    %373 = arith.mulf %372, %355 : vector<32x256xf32>
    %374 = arith.mulf %373, %359 : vector<32x256xf32>
    %cst_129 = arith.constant 1.000000e+00 : f32
    %375 = vector.broadcast %cst_129 : f32 to vector<32x256xf32>
    %376 = arith.subf %375, %374 : vector<32x256xf32>
    %377 = arith.mulf %349, %376 : vector<32x256xf32>
    %cst_130 = arith.constant 5.000000e-01 : f32
    %378 = vector.broadcast %cst_130 : f32 to vector<32x256xf32>
    %379 = arith.mulf %378, %342 : vector<32x256xf32>
    %cst_131 = arith.constant 1.000000e+00 : f32
    %380 = vector.broadcast %cst_131 : f32 to vector<32x256xf32>
    %381 = arith.addf %380, %377 : vector<32x256xf32>
    %382 = arith.mulf %379, %381 : vector<32x256xf32>
    %c0_132 = arith.constant 0 : index
    %c0_133 = arith.constant 0 : index
    %383 = vector.load %arg9[%c0_132, %c0_133] : memref<8x32xbf16, #tpu.memory_space<vmem>>, vector<8x32xbf16>
    %384 = arith.truncf %382 : vector<32x256xf32> to vector<32x256xbf16>
    %cst_134 = arith.constant dense<0.000000e+00> : vector<8x256xf32>
    %385 = tpu.matmul %383, %384, %cst_134 {dimension_numbers = #tpu.dot_dimension_numbers<[1], [0], [0], [1], [0, 0, 1, 1], [], []>} : vector<8x32xbf16>, vector<32x256xbf16>, vector<8x256xf32> -> vector<8x256xf32>
    %c0_135 = arith.constant 0 : index
    %c0_136 = arith.constant 0 : index
    %386 = vector.load %arg10[%c0_135, %c0_136] : memref<8x1xf32, #tpu.memory_space<vmem>>, vector<8x1xf32>
    %387 = vector.broadcast %386 : vector<8x1xf32> to vector<8x256xf32>
    %388 = arith.addf %385, %387 : vector<8x256xf32>
    %c0_137 = arith.constant 0 : index
    %c0_138 = arith.constant 0 : index
    %c0_139 = arith.constant 0 : index
    %c51 = arith.constant 51 : index
    %389 = vector.load %arg2[%c0_137, %c0_138, %c0_139, %c51] : memref<1x1x8x358xf32, #tpu.memory_space<vmem>>, vector<1x1x8x256xf32>
    %390 = vector.shape_cast %389 : vector<1x1x8x256xf32> to vector<8x256xf32>
    %391 = arith.addf %388, %390 : vector<8x256xf32>
    %c0_140 = arith.constant 0 : index
    %c0_141 = arith.constant 0 : index
    %c0_142 = arith.constant 0 : index
    %392 = vector.load %arg11[%c0_140, %c0_141, %c0_142] : memref<1x8x256xf32, #tpu.memory_space<vmem>>, vector<1x8x256xf32>
    %393 = vector.shape_cast %392 : vector<1x8x256xf32> to vector<8x256xf32>
    %394 = vector.shape_cast %391 : vector<8x256xf32> to vector<1x8x256xf32>
    tpu.vector_store %arg11[%c0_140, %c0_141, %c0_142], %394 {strides = array<i32>} : memref<1x8x256xf32, #tpu.memory_space<vmem>>, vector<1x8x256xf32>,
    return
  }
  func.func @transform_0(%arg0: i32, %arg1: i32) -> (i32, i32, i32, i32) {
    %c0_i32 = arith.constant 0 : i32
    %c0_i32_0 = arith.constant 0 : i32
    %c0_i32_1 = arith.constant 0 : i32
    return %arg0, %arg1, %c0_i32, %c0_i32_0 : i32, i32, i32, i32
  }
  func.func @transform_1(%arg0: i32, %arg1: i32) -> (i32, i32) {
    %c0_i32 = arith.constant 0 : i32
    %c0_i32_0 = arith.constant 0 : i32
    %c0_i32_1 = arith.constant 0 : i32
    return %c0_i32, %c0_i32_0 : i32, i32
  }
  func.func @transform_2(%arg0: i32, %arg1: i32) -> (i32, i32) {
    %c0_i32 = arith.constant 0 : i32
    %c0_i32_0 = arith.constant 0 : i32
    %c0_i32_1 = arith.constant 0 : i32
    return %c0_i32, %c0_i32_0 : i32, i32
  }
  func.func @transform_3(%arg0: i32, %arg1: i32) -> (i32, i32) {
    %c0_i32 = arith.constant 0 : i32
    %c0_i32_0 = arith.constant 0 : i32
    %c0_i32_1 = arith.constant 0 : i32
    return %c0_i32, %c0_i32_0 : i32, i32
  }
  func.func @transform_4(%arg0: i32, %arg1: i32) -> (i32, i32) {
    %c0_i32 = arith.constant 0 : i32
    %c0_i32_0 = arith.constant 0 : i32
    %c0_i32_1 = arith.constant 0 : i32
    return %c0_i32, %c0_i32_0 : i32, i32
  }
  func.func @transform_5(%arg0: i32, %arg1: i32) -> (i32, i32) {
    %c0_i32 = arith.constant 0 : i32
    %c0_i32_0 = arith.constant 0 : i32
    %c0_i32_1 = arith.constant 0 : i32
    return %c0_i32, %c0_i32_0 : i32, i32
  }
  func.func @transform_6(%arg0: i32, %arg1: i32) -> (i32, i32) {
    %c0_i32 = arith.constant 0 : i32
    %c0_i32_0 = arith.constant 0 : i32
    %c0_i32_1 = arith.constant 0 : i32
    return %c0_i32, %c0_i32_0 : i32, i32
  }
  func.func @transform_7(%arg0: i32, %arg1: i32) -> (i32, i32) {
    %c0_i32 = arith.constant 0 : i32
    %c0_i32_0 = arith.constant 0 : i32
    %c0_i32_1 = arith.constant 0 : i32
    return %c0_i32, %c0_i32_0 : i32, i32
  }
  func.func @transform_8(%arg0: i32, %arg1: i32) -> (i32, i32) {
    %c0_i32 = arith.constant 0 : i32
    %c0_i32_0 = arith.constant 0 : i32
    %c0_i32_1 = arith.constant 0 : i32
    return %c0_i32, %c0_i32_0 : i32, i32
  }
  func.func @transform_9(%arg0: i32, %arg1: i32) -> (i32, i32, i32) {
    %c0_i32 = arith.constant 0 : i32
    %c0_i32_0 = arith.constant 0 : i32
    return %arg0, %c0_i32, %arg1 : i32, i32, i32
  }
}

</mosaic_0001>

<bundles_post_ra>
// kernel: tpu_custom_call.1
= control target key start
LH: loop header
LB: loop body
LE: loop exit
PB: predicated region body
PF: predicated region fallthrough
CT: control target
= control target key end

     0   :  { %14 = vsyncpa [#allocation3], 0  ;;  %s3716_s0 = inlined_call_operand.vmem [shape: f32[2,1,8,358], index: 0, kind: input, shape index: {}]   ;;  %s3717_s1 = inlined_call_operand.vmem [shape: f32[8,49], index: 1, kind: input, shape index: {}]   ;;  %s3718_s2 = inlined_call_operand.vmem [shape: f32[8,1], index: 2, kind: input, shape index: {}]   ;;  %s3719_s3 = inlined_call_operand.vmem [shape: f32[8,1], index: 3, kind: input, shape index: {}]   ;;  %s3720_s4 = inlined_call_operand.vmem [shape: f32[8,1], index: 4, kind: input, shape index: {}]   ;;  %s3721_s5 = inlined_call_operand.vmem [shape: bf16[32,8], index: 5, kind: input, shape index: {}]   ;;  %s3722_s6 = inlined_call_operand.vmem [shape: f32[32,1], index: 6, kind: input, shape index: {}]   ;;  %s3723_s7 = inlined_call_operand.vmem [shape: bf16[8,32], index: 7, kind: input, shape index: {}]   ;;  %s3724_s8 = inlined_call_operand.vmem [shape: f32[8,1], index: 8, kind: input, shape index: {}]   ;;  %s3725_s9 = inlined_call_operand.hbm [shape: f32[2,8,256], index: 9, kind: output, shape index: {}]  }
   0x1   :  { %16 = vsyncpa [#allocation3 + $0x1], 0  ;;  %s2601_s30 = smov 0   ;;  %s2603_s10 = smov 0  }
   0x2   :  { %s2605_s11 = smov 0   ;;  %s2607_s12 = smov 0  }
   0x3   :  { %s2609_s13 = smov 0   ;;  %s2611_s14 = smov 0  }
   0x4 LB: > { %s2166_s15 = sadd.s32 4294967295, %s2485_s14   ;;  %s2167_s16 = sadd.s32 4294967294, %s2485_s14   ;;  %s2485_s14 = sphi %s2611_s14, %s22_s14   ;;  %s2481_s13 = sphi %s2609_s13, %s3738_s13   ;;  %s2477_s12 = sphi %s2607_s12, %s3737_s12   ;;  %s2473_s11 = sphi %s2605_s11, %s3736_s11   ;;  %s2469_s10 = sphi %s2603_s10, %s3735_s10   ;;  %s2465_s30 = sphi %s2601_s30, %s3734_s30  }
   0x5   : > { %s34_s17 = sadd.s32 1, %s2481_s13  ;;  %s239_s18 = sadd.s32 1, %s2473_s11 }
   0x6   : > { %p36_p0 = scmp.ge.s32.totalorder %s34_s17, 2  ;;  %p249_p1 = scmp.ne.s32.totalorder %s2473_s11, %s2469_s10 }
   0x7   : > { %p250_p2 = scmp.eq.s32.totalorder %s2166_s15, 1  ;;  %p255_p3 = scmp.ne.s32.totalorder %s2469_s10, %s2465_s30 }
   0x8   : > { %s3740_s17 = smov (%p36_p0, %s34_s17), 0  ;;  %p256_p5 = scmp.eq.s32.totalorder %s2167_s16, 1 }
   0x9   : > { %p2641_p4 = por %p250_p2, %p249_p1  ;;  %s234_s20 = ssub.s32 %s2481_s13, %s3740_s17 }
   0xa   : > { %p2170_p6 = scmp.ge.s32.totalorder %s2485_s14, 1  ;;  %p237_p7 = scmp.eq.s32.totalorder %s234_s20, 0 }
   0xb   : > { %p2648_p8 = por %p256_p5, %p255_p3  ;;  %p310_p9 = scmp.lt.s32.totalorder %s2485_s14, 3 }
   0xc   : > { %s2654_s22 = scalar_select %p237_p7, %s2473_s11, %s239_s18  }
   0xd   : > { %p311_p10 = pnand %p2170_p6, %p310_p9 }
   0xf   : > { %314 = sbr.rel (%p311_p10) target bundleno = 1510 (0x5e6), region = 56 }
  0x14   : > { %v2659_v0 = vld [vmem:[%s3717_s1] sm:$0xff]  ;;  %v2487_v1 = vmov 21   ;;  %v2488_v2 = vmov 7   ;;  %v2489_v3 = vmov 14   ;;  %v2490_v4 = vmov 35   ;;  %p350_p11 = scmp.lt.s32.totalorder %s2477_s12, 1 }
  0x15   : > { %2317 = vset.pattern.permute.xlu2 %v2487_v1  ;;  %2315 = vset.pattern.permute.xlu1 %v2488_v2  ;;  %v2491_v5 = vmov 28   ;;  %v2492_v6 = vmov 1   ;;  %v2493_v7 = vmov 42   ;;  %v2494_v8 = vmov 15   ;;  %s2498_s15 = smov 80   ;;  %s2499_s16 = smov 48  }
  0x16   : > { %452 = vperm.xlu2 %2317, %v2659_v0   ;;  %406 = vperm.xlu1 %2315, %v2659_v0   ;;  %v2495_v9 = vmov 8   ;;  %v2496_v10 = vmov 29   ;;  %v2497_v11 = vmov 22   ;;  %s351_s25 = scalar_select %p350_p11, %s2477_s12, 1  ;;  %v2500_v17 = vmov 36  }
  0x17   : > { %2316 = vset.pattern.permute.xlu0 %v2489_v3  ;;  %s2501_s18 = smov 112   ;;  %s2502_s20 = smov 96   ;;  %v2505_v57 = vmov 43   ;;  %vm421_vm0 = vcmask 916480   ;;  %vm444_vm1 = vcmask 785408   ;;  %vm467_vm2 = vcmask 654336  }
  0x18   : > { %429 = vperm.xlu0 %2316, %v2659_v0   ;;  %s2195_s26 = smul.u32 24, %s351_s25  ;;  %s2503_s23 = smov 64   ;;  %vm490_vm3 = vcmask 523264   ;;  %vm513_vm4 = vcmask 392192   ;;  %vm536_vm5 = vcmask 261120   ;;  %vm731_vm6 = vcmask 1039360  }
  0x19   : > { %s2504_s24 = smov 32   ;;  %s2516_s25 = smov 127   ;;  %vm912_vm11 = vcmask 1031168   ;;  %vm1260_vm14 = vcmask 1014784   ;;  %vm1081_vm15 = vcmask 1022976  }
  0x1a   : > { %s2677_s29 = scalar_lea.vmem %s3716_s0, %s2195_s26  ;;  %s2543_s28 = smov 126  }
  0x1b   : > { %v2680_v12 = vld [vmem:[%s2677_s29] sm:$0xff]  ;;  %v2689_v19 = vld [vmem:[%s2677_s29 + $0x8] sm:$0xff]  ;;  %v2698_v26 = vld [vmem:[%s2677_s29 + $0x10] sm:$0xff] }
  0x1e   : > { %2319 = vset.pattern.permute.xlu2 %v2490_v4 }
  0x1f   : > { %498 = vperm.xlu2 %2319, %v2659_v0  }
  0x20   : > { %2318 = vset.pattern.permute.xlu0 %v2491_v5 }
  0x21   : > { %475 = vperm.xlu0 %2318, %v2659_v0  }
  0x27   : > { %2321 = vset.pattern.permute.xlu2 %v2492_v6 }
  0x28   : > { %560 = vperm.xlu2 %2321, %v2659_v0  }
  0x29   : > { %2320 = vset.pattern.permute.xlu0 %v2493_v7 }
  0x2a   : > { %521 = vperm.xlu0 %2320, %v2659_v0  }
  0x30   : > { %2323 = vset.pattern.permute.xlu2 %v2494_v8 }
  0x31   : > { %591 = vperm.xlu2 %2323, %v2659_v0  }
  0x32   : > { %2322 = vset.pattern.permute.xlu0 %v2495_v9 }
  0x33   : > { %567 = vperm.xlu0 %2322, %v2659_v0  }
  0x39   : > { %2325 = vset.pattern.permute.xlu2 %v2496_v10 }
  0x3a   : > { %639 = vperm.xlu2 %2325, %v2659_v0  }
  0x3b   : > { %2324 = vset.pattern.permute.xlu0 %v2497_v11 }
  0x3c   : > { %615 = vperm.xlu0 %2324, %v2659_v0  }
  0x42   : > { %2327 = vset.pattern.permute.xlu2 %v2505_v57 }
  0x44   : > { %2326 = vset.pattern.permute.xlu0 %v2500_v17  ;;  %v2507_v17 = vmov 2  }
  0x70   : > { %v453_v13 = vpop.permute.xlu2 %452 }
  0x71   : > { %v455_v14 = vmul.f32 %v453_v13, %v2680_v12  ;;  %v457_v33 = vmul.f32 %v453_v13, %v2698_v26  ;;  %v456_v34 = vmul.f32 %v453_v13, %v2689_v19 }
  0x73   : > { %461 = vrot.lane.b32.xlu0 %v455_v14, %s2498_s15 }
  0x79   : > { %v499_v15 = vpop.permute.xlu2 %498 }
  0x7a   : > { %v501_v16 = vmul.f32 %v499_v15, %v2680_v12  ;;  %v503_v39 = vmul.f32 %v499_v15, %v2698_v26  ;;  %v502_v42 = vmul.f32 %v499_v15, %v2689_v19 }
  0x7c   : > { %507 = vrot.lane.b32.xlu0 %v501_v16, %s2499_s16  ;;  %v2506_v16 = vmov 9  }
  0x7d   : > { %2329 = vset.pattern.permute.xlu1 %v2506_v16 }
  0x82   : > { %v2686_v18 = vpop.permute.xlu2 %560 }
  0x88   : > { %v407_v20 = vpop.permute.xlu1 %406 }
  0x89   : > { %v410_v21 = vmul.f32 %v407_v20, %v2689_v19  ;;  %v409_v22 = vmul.f32 %v407_v20, %v2680_v12  ;;  %v411_v27 = vmul.f32 %v407_v20, %v2698_v26 }
  0x8a   : > { %v430_v25 = vpop.permute.xlu0 %429 }
  0x8b   : > { %v592_v23 = vpop.permute.xlu2 %591  ;;  %417 = vrot.lane.b32.xlu2 %v410_v21, %s2501_s18  ;;  %415 = vrot.lane.b32.xlu1 %v409_v22, %s2501_s18  ;;  %v432_v28 = vmul.f32 %v430_v25, %v2680_v12  ;;  %v433_v31 = vmul.f32 %v430_v25, %v2689_v19  ;;  %v434_v32 = vmul.f32 %v430_v25, %v2698_v26 }
  0x8c   : > { %v594_v24 = vmul.f32 %v592_v23, %v2680_v12  ;;  %v596_v47 = vmul.f32 %v592_v23, %v2698_v26  ;;  %v595_v53 = vmul.f32 %v592_v23, %v2689_v19 }
  0x8e   : > { %600 = vrot.lane.b32.xlu0 %v594_v24, %s2502_s20 }
  0x93   : > { %419 = vrot.lane.b32.xlu2 %v411_v27, %s2501_s18  ;;  %438 = vrot.lane.b32.xlu1 %v432_v28, %s2502_s20  ;;  %v476_v35 = vpop.permute.xlu0 %475 }
  0x94   : > { %v640_v29 = vpop.permute.xlu2 %639  ;;  %v479_v36 = vmul.f32 %v476_v35, %v2689_v19  ;;  %v478_v37 = vmul.f32 %v476_v35, %v2680_v12  ;;  %v480_v38 = vmul.f32 %v476_v35, %v2698_v26 }
  0x95   : > { %v642_v30 = vmul.f32 %v640_v29, %v2680_v12  ;;  %v644_v52 = vmul.f32 %v640_v29, %v2698_v26  ;;  %v643_v59 = vmul.f32 %v640_v29, %v2689_v19 }
  0x97   : > { %648 = vrot.lane.b32.xlu0 %v642_v30, %s2503_s23 }
  0x9b   : > { %440 = vrot.lane.b32.xlu2 %v433_v31, %s2502_s20  ;;  %442 = vrot.lane.b32.xlu1 %v434_v32, %s2502_s20  ;;  %v2508_v32 = vmov 16  }
  0x9c   : > { %v522_v40 = vpop.permute.xlu0 %521 }
  0x9d   : > { %v525_v41 = vmul.f32 %v522_v40, %v2689_v19  ;;  %v524_v45 = vmul.f32 %v522_v40, %v2680_v12  ;;  %v526_v46 = vmul.f32 %v522_v40, %v2698_v26 }
  0x9f   : > { %663 = vperm.xlu0 %2326, %v2659_v0  }
  0xa3   : > { %465 = vrot.lane.b32.xlu2 %v457_v33, %s2498_s15  ;;  %463 = vrot.lane.b32.xlu1 %v456_v34, %s2498_s15  ;;  %v2509_v34 = vmov 17  }
  0xa5   : > { %v568_v43 = vpop.permute.xlu0 %567 }
  0xa6   : > { %v571_v44 = vmul.f32 %v568_v43, %v2689_v19  ;;  %v570_v50 = vmul.f32 %v568_v43, %v2680_v12  ;;  %v572_v51 = vmul.f32 %v568_v43, %v2698_v26 }
  0xa7   : > { %2328 = vset.pattern.permute.xlu0 %v2507_v17 }
  0xab   : > { %486 = vrot.lane.b32.xlu2 %v479_v36, %s2503_s23  ;;  %484 = vrot.lane.b32.xlu1 %v478_v37, %s2503_s23 }
  0xae   : > { %v616_v48 = vpop.permute.xlu0 %615 }
  0xaf   : > { %v619_v49 = vmul.f32 %v616_v48, %v2689_v19  ;;  %v618_v54 = vmul.f32 %v616_v48, %v2680_v12  ;;  %v620_v56 = vmul.f32 %v616_v48, %v2698_v26  ;;  %v2514_v48 = vmov 10  }
  0xb3   : > { %511 = vrot.lane.b32.xlu2 %v503_v39, %s2499_s16  ;;  %488 = vrot.lane.b32.xlu1 %v480_v38, %s2503_s23  ;;  %v2510_v39 = vmov 37  }
  0xbb   : > { %532 = vrot.lane.b32.xlu2 %v525_v41, %s2504_s24  ;;  %509 = vrot.lane.b32.xlu1 %v502_v42, %s2499_s16  ;;  %v2511_v41 = vmov 44   ;;  %v2512_v42 = vmov 39  }
  0xc3   : > { %578 = vrot.lane.b32.xlu2 %v571_v44, %s2501_s18  ;;  %530 = vrot.lane.b32.xlu1 %v524_v45, %s2504_s24  ;;  %v2513_v45 = vmov 40  }
  0xcb   : > { %604 = vrot.lane.b32.xlu2 %v596_v47, %s2502_s20  ;;  %534 = vrot.lane.b32.xlu1 %v526_v46, %s2504_s24 }
  0xd3   : > { %626 = vrot.lane.b32.xlu2 %v619_v49, %s2498_s15  ;;  %576 = vrot.lane.b32.xlu1 %v570_v50, %s2501_s18  ;;  %v2515_v49 = vmov 23   ;;  %v563_v50 = vmul.f32 %v2686_v18, %v2680_v12 }
  0xdb   : > { %652 = vrot.lane.b32.xlu2 %v644_v52, %s2503_s23  ;;  %580 = vrot.lane.b32.xlu1 %v572_v51, %s2501_s18 }
  0xe3   : > { %602 = vrot.lane.b32.xlu1 %v595_v53, %s2502_s20 }
  0xe5   : > { %v2747_v55 = vpop.permute.xlu0 %461  ;;  %v2757_v61 = vpop.permute.xlu2 %417 }
  0xeb   : > { %624 = vrot.lane.b32.xlu1 %v618_v54, %s2498_s15 }
  0xed   : > { %v2761_v63 = vpop.permute.xlu2 %419 }
  0xee   : > { %v2751_v58 = vpop.permute.xlu0 %507 }
  0xf3   : > { %628 = vrot.lane.b32.xlu1 %v620_v56, %s2498_s15 }
  0xf5   : > { %v2767_v4 = vpop.permute.xlu2 %440 }
  0xfb   : > { %650 = vrot.lane.b32.xlu1 %v643_v59, %s2503_s23 }
  0xfd   : > { %v2772_v6 = vpop.permute.xlu2 %465  ;;  %v2780_v10 = vpop.permute.xlu1 %415 }
 0x100   : > { %v2755_v60 = vpop.permute.xlu0 %600 }
 0x105   : > { %v2774_v7 = vpop.permute.xlu2 %486  ;;  %v2784_v13 = vpop.permute.xlu1 %438 }
 0x109   : > { %v2759_v62 = vpop.permute.xlu0 %648 }
 0x10d   : > { %v2776_v8 = vpop.permute.xlu2 %511  ;;  %v2788_v15 = vpop.permute.xlu1 %442 }
 0x111   : > { %v664_v1 = vpop.permute.xlu0 %663 }
 0x112   : > { %v666_v2 = vmul.f32 %v664_v1, %v2680_v12  ;;  %v667_v3 = vmul.f32 %v664_v1, %v2689_v19  ;;  %v668_v5 = vmul.f32 %v664_v1, %v2698_v26 }
 0x114   : > { %674 = vrot.lane.b32.xlu2 %v667_v3, %s2499_s16  ;;  %672 = vrot.lane.b32.xlu1 %v666_v2, %s2499_s16 }
 0x115   : > { %v2778_v9 = vpop.permute.xlu2 %532  ;;  %v2792_v21 = vpop.permute.xlu1 %463 }
 0x11c   : > { %687 = vperm.xlu2 %2327, %v2659_v0   ;;  %676 = vrot.lane.b32.xlu1 %v668_v5, %s2499_s16 }
 0x11d   : > { %v2782_v11 = vpop.permute.xlu2 %578  ;;  %v2796_v23 = vpop.permute.xlu1 %484 }
 0x124   : > { %2331 = vset.pattern.permute.xlu2 %v2514_v48  ;;  %v2524_v48 = vmov 13  }
 0x125   : > { %v2786_v14 = vpop.permute.xlu2 %604  ;;  %v2803_v30 = vpop.permute.xlu1 %488 }
 0x12d   : > { %v2790_v20 = vpop.permute.xlu2 %626  ;;  %v2809_v31 = vpop.permute.xlu1 %509 }
 0x135   : > { %v2794_v22 = vpop.permute.xlu2 %652  ;;  %v2813_v33 = vpop.permute.xlu1 %530 }
 0x13d   : > { %v2816_v35 = vpop.permute.xlu1 %534 }
 0x145   : > { %v577_v36 = vpop.permute.xlu1 %576 }
 0x146   : > { %v582_v47 = vsel %vm421_vm0, %v577_v36, %v2782_v11 }
 0x147   : > { %v587_v52 = vadd.f32 %v582_v47, %v563_v50  ;;  %v2523_v47 = vmov 19   ;;  %v2526_v50 = vmov 32  }
 0x14d   : > { %v2818_v37 = vpop.permute.xlu1 %580 }
 0x155   : > { %v2820_v38 = vpop.permute.xlu1 %602 }
 0x156   : > { %v606_v51 = vsel %vm444_vm1, %v2755_v60, %v2820_v38 }
 0x157   : > { %v611_v56 = vadd.f32 %v606_v51, %v587_v52  ;;  %v2527_v51 = vmov 26   ;;  %v2528_v52 = vmov 20  }
 0x15d   : > { %v625_v40 = vpop.permute.xlu1 %624 }
 0x15e   : > { %v630_v54 = vsel %vm467_vm2, %v625_v40, %v2790_v20  ;;  %v2518_v40 = vmov 30  }
 0x15f   : > { %v635_v59 = vadd.f32 %v630_v54, %v611_v56  ;;  %v583_v54 = vsel %vm421_vm0, %v2782_v11, %v2818_v37  ;;  %v564_v56 = vmul.f32 %v2686_v18, %v2689_v19 }
 0x165   : > { %v2824_v43 = vpop.permute.xlu1 %628 }
 0x16d   : > { %v2827_v44 = vpop.permute.xlu1 %650 }
 0x16e   : > { %v2798_v24 = vpop.permute.xlu2 %674  ;;  %v654_v57 = vsel %vm490_vm3, %v2759_v62, %v2827_v44  ;;  %v655_v11 = vsel %vm490_vm3, %v2827_v44, %v2794_v22 }
 0x16f   : > { %v659_v2 = vadd.f32 %v654_v57, %v635_v59  ;;  %v607_v57 = vsel %vm444_vm1, %v2820_v38, %v2786_v14  ;;  %v588_v59 = vadd.f32 %v583_v54, %v564_v56 }
 0x176   : > { %v688_v25 = vpop.permute.xlu2 %687 }
 0x177   : > { %v692_v27 = vmul.f32 %v688_v25, %v2698_v26  ;;  %v690_v28 = vmul.f32 %v688_v25, %v2680_v12  ;;  %v691_v29 = vmul.f32 %v688_v25, %v2689_v19 }
 0x179   : > { %700 = vrot.lane.b32.xlu2 %v692_v27, %s2504_s24  ;;  %696 = vrot.lane.b32.xlu0 %v690_v28, %s2504_s24 }
 0x17a   : > { %698 = vrot.lane.b32.xlu1 %v691_v29, %s2504_s24 }
 0x181   : > { %741 = vperm.xlu0 %2328, %v2659_v0  }
 0x182   : > { %748 = vperm.xlu1 %2329, %v2659_v0  }
 0x186   : > { %v673_v46 = vpop.permute.xlu1 %672 }
 0x187   : > { %v678_v1 = vsel %vm513_vm4, %v673_v46, %v2798_v24  ;;  %v2522_v46 = vmov 25  }
 0x188   : > { %v683_v3 = vadd.f32 %v678_v1, %v659_v2  ;;  %v631_v1 = vsel %vm467_vm2, %v2790_v20, %v2824_v43  ;;  %v612_v2 = vadd.f32 %v607_v57, %v588_v59 }
 0x189   : > { %2330 = vset.pattern.permute.xlu0 %v2508_v32 }
 0x18a   : > { %772 = vperm.xlu0 %2330, %v2659_v0   ;;  %2332 = vset.pattern.permute.xlu1 %v2515_v49  ;;  %v2525_v49 = vmov 31  }
 0x18e   : > { %v2836_v53 = vpop.permute.xlu1 %676 }
 0x18f   : > { %v679_v20 = vsel %vm513_vm4, %v2798_v24, %v2836_v53  ;;  %v2533_v24 = vmov 45  }
 0x192   : > { %2334 = vset.pattern.permute.xlu0 %v2509_v34 }
 0x193   : > { %953 = vperm.xlu0 %2334, %v2659_v0  }
 0x19b   : > { %2339 = vset.pattern.permute.xlu0 %v2510_v39  ;;  %v2517_v39 = vmov 11  }
 0x19c   : > { %844 = vperm.xlu0 %2339, %v2659_v0  }
 0x1a4   : > { %2344 = vset.pattern.permute.xlu0 %v2511_v41  ;;  %v2519_v41 = vmov 18  }
 0x1a5   : > { %868 = vperm.xlu0 %2344, %v2659_v0  }
 0x1ad   : > { %2349 = vset.pattern.permute.xlu0 %v2512_v42  ;;  %v2520_v42 = vmov 12  }
 0x1ae   : > { %1192 = vperm.xlu0 %2349, %v2659_v0  }
 0x1b6   : > { %2354 = vset.pattern.permute.xlu0 %v2513_v45  ;;  %v2521_v45 = vmov 24  }
 0x1eb   : > { %v697_v60 = vpop.permute.xlu0 %696 }
 0x1ec   : > { %v2845_v5 = vpop.permute.xlu1 %698 }
 0x1ed   : > { %v702_v16 = vsel %vm536_vm5, %v697_v60, %v2845_v5  ;;  %v565_v60 = vmul.f32 %v2686_v18, %v2698_v26 }
 0x1ee   : > { %v707_v17 = vadd.f32 %v702_v16, %v683_v3  ;;  %v2529_v3 = vmov 38   ;;  %v2530_v16 = vmov 33  }
 0x1ef   : > { %v589_v38 = vadd.f32 %v2818_v37, %v565_v60 }
 0x1f0   : > { %725 = vrot.lane.b32.xlu0 %v707_v17, %s2516_s25  ;;  %v636_v17 = vadd.f32 %v631_v1, %v612_v2 }
 0x1f2   : > { %v660_v18 = vadd.f32 %v655_v11, %v636_v17  ;;  %v2540_v17 = vmov 5  }
 0x1f3   : > { %v2850_v25 = vpop.permute.xlu0 %741 }
 0x1f4   : > { %v749_v62 = vpop.permute.xlu1 %748 }
 0x1f5   : > { %v752_v27 = vmul.f32 %v749_v62, %v2689_v19  ;;  %v751_v28 = vmul.f32 %v749_v62, %v2680_v12  ;;  %v753_v36 = vmul.f32 %v749_v62, %v2698_v26  ;;  %v701_v62 = vpop.permute.xlu2 %700 }
 0x1f6   : > { %v703_v44 = vsel %vm536_vm5, %v2845_v5, %v701_v62 }
 0x1f7   : > { %759 = vrot.lane.b32.xlu1 %v752_v27, %s2501_s18  ;;  %757 = vrot.lane.b32.xlu2 %v751_v28, %s2501_s18  ;;  %v684_v27 = vadd.f32 %v679_v20, %v660_v18  ;;  %v613_v28 = vadd.f32 %v2786_v14, %v589_v38  ;;  %v2541_v38 = vmov 6  }
 0x1f8   : > { %1373 = vperm.xlu0 %2354, %v2659_v0  }
 0x1fc   : > { %v2857_v29 = vpop.permute.xlu0 %772 }
 0x1fd   : > { %v775_v32 = vmul.f32 %v2857_v29, %v2680_v12  ;;  %v776_v34 = vmul.f32 %v2857_v29, %v2689_v19 }
 0x1ff   : > { %761 = vrot.lane.b32.xlu2 %v753_v36, %s2501_s18  ;;  %781 = vrot.lane.b32.xlu1 %v775_v32, %s2502_s20  ;;  %v708_v32 = vadd.f32 %v703_v44, %v684_v27  ;;  %v2531_v36 = vmov 4  }
 0x200   : > { %783 = vrot.lane.b32.xlu0 %v776_v34, %s2502_s20  ;;  %v637_v34 = vadd.f32 %v2824_v43, %v613_v28  ;;  %v2534_v43 = vmov 46   ;;  %v2542_v28 = vmov 0  }
 0x201   : > { %2360 = vset.pattern.permute.xlu0 %v2531_v36 }
 0x202   : > { %v661_v37 = vadd.f32 %v2794_v22, %v637_v34 }
 0x204   : > { %v685_v5 = vadd.f32 %v2836_v53, %v661_v37  ;;  %v2536_v53 = vmov 47  }
 0x205   : > { %v954_v57 = vpop.permute.xlu0 %953 }
 0x206   : > { %v709_v14 = vadd.f32 %v701_v62, %v685_v5  ;;  %v957_v59 = vmul.f32 %v954_v57, %v2689_v19  ;;  %v958_v37 = vmul.f32 %v954_v57, %v2698_v26 }
 0x207   : > { %929 = vperm.xlu2 %2331, %v2659_v0   ;;  %796 = vperm.xlu1 %2332, %v2659_v0  }
 0x20f   : > { %2333 = vset.pattern.permute.xlu2 %v2517_v39  ;;  %2335 = vset.pattern.permute.xlu1 %v2518_v40  ;;  %v2532_v39 = vmov 27  }
 0x210   : > { %1096 = vperm.xlu2 %2333, %v2659_v0   ;;  %820 = vperm.xlu1 %2335, %v2659_v0  }
 0x218   : > { %2336 = vset.pattern.permute.xlu2 %v2519_v41  ;;  %2337 = vset.pattern.permute.xlu1 %v2520_v42  ;;  %v2535_v42 = vmov 34  }
 0x219   : > { %1120 = vperm.xlu2 %2336, %v2659_v0   ;;  %1277 = vperm.xlu1 %2337, %v2659_v0  }
 0x221   : > { %2338 = vset.pattern.permute.xlu2 %v2521_v45  ;;  %2340 = vset.pattern.permute.xlu1 %v2522_v46  ;;  %v2537_v46 = vmov 41  }
 0x222   : > { %977 = vperm.xlu2 %2338, %v2659_v0   ;;  %1144 = vperm.xlu1 %2340, %v2659_v0  }
 0x22a   : > { %2341 = vset.pattern.permute.xlu2 %v2523_v47  ;;  %2342 = vset.pattern.permute.xlu1 %v2524_v48 }
 0x22b   : > { %1301 = vperm.xlu2 %2341, %v2659_v0   ;;  %1458 = vperm.xlu1 %2342, %v2659_v0  }
 0x233   : > { %2343 = vset.pattern.permute.xlu2 %v2525_v49  ;;  %2345 = vset.pattern.permute.xlu1 %v2526_v50  ;;  %v777_v49 = vmul.f32 %v2857_v29, %v2698_v26  ;;  %v2538_v50 = vmov 48   ;;  %v2539_v29 = vmov 3  }
 0x234   : > { %1001 = vperm.xlu2 %2343, %v2659_v0   ;;  %1168 = vperm.xlu1 %2345, %v2659_v0  }
 0x23c   : > { %2346 = vset.pattern.permute.xlu2 %v2527_v51  ;;  %2347 = vset.pattern.permute.xlu1 %v2528_v52 }
 0x23d   : > { %1325 = vperm.xlu2 %2346, %v2659_v0   ;;  %1482 = vperm.xlu1 %2347, %v2659_v0  }
 0x245   : > { %2348 = vset.pattern.permute.xlu2 %v2529_v3  ;;  %2350 = vset.pattern.permute.xlu1 %v2530_v16 }
 0x246   : > { %1025 = vperm.xlu2 %2348, %v2659_v0   ;;  %1349 = vperm.xlu1 %2350, %v2659_v0  }
 0x24e   : > { %2351 = vset.pattern.permute.xlu2 %v2532_v39  ;;  %727 = vrot.lane.b32.xlu1 %v708_v32, %s2516_s25 }
 0x24f   : > { %1506 = vperm.xlu2 %2351, %v2659_v0   ;;  %2352 = vset.pattern.permute.xlu1 %v2533_v24 }
 0x251   : > { %v2910_v40 = vpop.permute.xlu2 %757 }
 0x256   : > { %1049 = vperm.xlu1 %2352, %v2659_v0  }
 0x257   : > { %729 = vrot.lane.b32.xlu2 %v709_v14, %s2516_s25  ;;  %v956_v14 = vmul.f32 %v954_v57, %v2680_v12 }
 0x258   : > { %2353 = vset.pattern.permute.xlu2 %v2534_v43 }
 0x259   : > { %v2915_v41 = vpop.permute.xlu2 %761 }
 0x25e   : > { %2355 = vset.pattern.permute.xlu1 %v2535_v42  ;;  %v845_v42 = vpop.permute.xlu0 %844 }
 0x25f   : > { %1216 = vperm.xlu2 %2353, %v2659_v0   ;;  %1530 = vperm.xlu1 %2355, %v2659_v0  }
 0x261   : > { %v930_v22 = vpop.permute.xlu2 %929 }
 0x262   : > { %v932_v45 = vmul.f32 %v930_v22, %v2680_v12  ;;  %v933_v56 = vmul.f32 %v930_v22, %v2689_v19  ;;  %v934_v11 = vmul.f32 %v930_v22, %v2698_v26 }
 0x264   : > { %938 = vrot.lane.b32.xlu0 %v932_v45, %s2501_s18 }
 0x267   : > { %2356 = vset.pattern.permute.xlu2 %v2536_v53  ;;  %2357 = vset.pattern.permute.xlu1 %v2537_v46  ;;  %v2985_v46 = vpop.permute.xlu0 %868 }
 0x268   : > { %1397 = vperm.xlu2 %2356, %v2659_v0   ;;  %1554 = vperm.xlu1 %2357, %v2659_v0  }
 0x269   : > { %v2923_v47 = vpop.permute.xlu1 %759 }
 0x26a   : > { %v1097_v48 = vpop.permute.xlu2 %1096 }
 0x26b   : > { %v1100_v51 = vmul.f32 %v1097_v48, %v2689_v19  ;;  %v1101_v32 = vmul.f32 %v1097_v48, %v2698_v26  ;;  %v1099_v36 = vmul.f32 %v1097_v48, %v2680_v12 }
 0x26c   : > { %1089 = vperm.xlu0 %2360, %v2659_v0  }
 0x270   : > { %2358 = vset.pattern.permute.xlu2 %v2538_v50  ;;  %785 = vrot.lane.b32.xlu1 %v777_v49, %s2502_s20 }
 0x271   : > { %1578 = vperm.xlu2 %2358, %v2659_v0   ;;  %v2931_v52 = vpop.permute.xlu1 %781  ;;  %2365 = vset.pattern.permute.xlu1 %v2542_v28 }
 0x273   : > { %v2933_v54 = vpop.permute.xlu2 %1120 }
 0x274   : > { %1107 = vrot.lane.b32.xlu0 %v1100_v51, %s2501_s18  ;;  %v1123_v44 = vmul.f32 %v2933_v54, %v2680_v12  ;;  %v1124_v49 = vmul.f32 %v2933_v54, %v2689_v19 }
 0x275   : > { %2362 = vset.pattern.permute.xlu0 %v2541_v38 }
 0x278   : > { %940 = vrot.lane.b32.xlu1 %v933_v56, %s2501_s18  ;;  %v391_v56 = vld [vmem:[%s3718_s2] sm:$0xff] }
 0x279   : > { %2359 = vset.pattern.permute.xlu2 %v2539_v29  ;;  %v797_v1 = vpop.permute.xlu1 %796  ;;  %v3002_v29 = vpop.permute.xlu0 %1192 }
 0x27a   : > { %922 = vperm.xlu2 %2359, %v2659_v0   ;;  %v799_v60 = vmul.f32 %v797_v1, %v2680_v12  ;;  %v801_v18 = vmul.f32 %v797_v1, %v2698_v26  ;;  %v800_v62 = vmul.f32 %v797_v1, %v2689_v19  ;;  %v1125_v1 = vmul.f32 %v2933_v54, %v2698_v26 }
 0x27c   : > { %964 = vrot.lane.b32.xlu0 %v957_v59, %s2502_s20  ;;  %v2941_v2 = vpop.permute.xlu2 %977 }
 0x27d   : > { %v980_v43 = vmul.f32 %v2941_v2, %v2680_v12 }
 0x280   : > { %805 = vrot.lane.b32.xlu1 %v799_v60, %s2498_s15 }
 0x281   : > { %v3017_v38 = vpop.permute.xlu0 %725 }
 0x282   : > { %942 = vrot.lane.b32.xlu2 %v934_v11, %s2501_s18  ;;  %v821_v3 = vpop.permute.xlu1 %820  ;;  %v981_v11 = vmul.f32 %v2941_v2, %v2689_v19 }
 0x283   : > { %v823_v16 = vmul.f32 %v821_v3, %v2680_v12  ;;  %2361 = vset.pattern.permute.xlu2 %v2540_v17  ;;  %v824_v45 = vmul.f32 %v821_v3, %v2689_v19  ;;  %v825_v50 = vmul.f32 %v821_v3, %v2698_v26 }
 0x285   : > { %829 = vrot.lane.b32.xlu0 %v823_v16, %s2503_s23  ;;  %v2949_v20 = vpop.permute.xlu2 %1301 }
 0x288   : > { %809 = vrot.lane.b32.xlu1 %v801_v18, %s2498_s15  ;;  %v847_v18 = vmul.f32 %v845_v42, %v2680_v12 }
 0x28a   : > { %807 = vrot.lane.b32.xlu2 %v800_v62, %s2498_s15 }
 0x28b   : > { %v1278_v27 = vpop.permute.xlu1 %1277 }
 0x28c   : > { %v1280_v39 = vmul.f32 %v1278_v27, %v2680_v12  ;;  %v1281_v57 = vmul.f32 %v1278_v27, %v2689_v19  ;;  %v1282_v3 = vmul.f32 %v1278_v27, %v2698_v26 }
 0x28d   : > { %1129 = vrot.lane.b32.xlu0 %v1123_v44, %s2502_s20 }
 0x28e   : > { %v2959_v34 = vpop.permute.xlu2 %1001 }
 0x290   : > { %1109 = vrot.lane.b32.xlu1 %v1101_v32, %s2501_s18  ;;  %v1305_v32 = vmul.f32 %v2949_v20, %v2689_v19 }
 0x292   : > { %1105 = vrot.lane.b32.xlu2 %v1099_v36, %s2501_s18  ;;  %v849_v36 = vmul.f32 %v845_v42, %v2698_v26 }
 0x294   : > { %v2965_v24 = vpop.permute.xlu1 %1144 }
 0x295   : > { %1286 = vrot.lane.b32.xlu0 %v1280_v39, %s2501_s18  ;;  %v1148_v54 = vmul.f32 %v2965_v24, %v2689_v19 }
 0x297   : > { %v2969_v5 = vpop.permute.xlu2 %1325 }
 0x298   : > { %966 = vrot.lane.b32.xlu1 %v958_v37, %s2502_s20 }
 0x29a   : > { %962 = vrot.lane.b32.xlu2 %v956_v14, %s2502_s20 }
 0x29d   : > { %v2976_v22 = vpop.permute.xlu1 %1458  ;;  %986 = vrot.lane.b32.xlu0 %v980_v43, %s2498_s15 }
 0x29e   : > { %v1462_v14 = vmul.f32 %v2976_v22, %v2689_v19 }
 0x2a0   : > { %831 = vrot.lane.b32.xlu1 %v824_v45, %s2503_s23  ;;  %v2981_v53 = vpop.permute.xlu2 %1025  ;;  %v1149_v45 = vmul.f32 %v2965_v24, %v2698_v26 }
 0x2a2   : > { %1270 = vperm.xlu2 %2361, %v2659_v0  }
 0x2a5   : > { %1451 = vperm.xlu0 %2362, %v2659_v0  }
 0x2a6   : > { %v2987_v48 = vpop.permute.xlu1 %1168 }
 0x2a8   : > { %1131 = vrot.lane.b32.xlu1 %v1124_v49, %s2502_s20 }
 0x2a9   : > { %v2993_v51 = vpop.permute.xlu2 %1506 }
 0x2aa   : > { %833 = vrot.lane.b32.xlu2 %v825_v50, %s2503_s23  ;;  %v1005_v50 = vmul.f32 %v2959_v34, %v2689_v19 }
 0x2ab   : > { %2364 = vset.pattern.permute.xlu2 %v2542_v28 }
 0x2ad   : > { %2363 = vset.pattern.permute.xlu0 %v2542_v28  ;;  %v3036_v28 = vpop.permute.xlu0 %1373 }
 0x2ae   : > { %394 = vperm.xlu0 %2363, %v391_v56  }
 0x2af   : > { %v3000_v59 = vpop.permute.xlu1 %1482 }
 0x2b0   : > { %1288 = vrot.lane.b32.xlu1 %v1281_v57, %s2501_s18  ;;  %v1306_v57 = vmul.f32 %v2949_v20, %v2698_v26 }
 0x2b1   : > { %v730_v60 = vpop.permute.xlu2 %729 }
 0x2b2   : > { %1133 = vrot.lane.b32.xlu2 %v1125_v1, %s2502_s20 }
 0x2b5   : > { %v784_v43 = vpop.permute.xlu0 %783 }
 0x2b6   : > { %400 = vperm.xlu0 %2363, %v2659_v0   ;;  %v982_v0 = vmul.f32 %v2941_v2, %v2698_v26  ;;  %v848_v2 = vmul.f32 %v845_v42, %v2689_v19  ;;  %v1147_v42 = vmul.f32 %v2965_v24, %v2680_v12 }
 0x2b8   : > { %v3012_v16 = vpop.permute.xlu1 %1349  ;;  %988 = vrot.lane.b32.xlu1 %v981_v11, %s2498_s15 }
 0x2b9   : > { %v3015_v17 = vpop.permute.xlu2 %1216 }
 0x2ba   : > { %1290 = vrot.lane.b32.xlu2 %v1282_v3, %s2501_s18  ;;  %v872_v3 = vmul.f32 %v2985_v46, %v2689_v19 }
 0x2be   : > { %1155 = vrot.lane.b32.xlu0 %v1148_v54, %s2498_s15 }
 0x2c0   : > { %v3026_v62 = vpop.permute.xlu1 %727  ;;  %853 = vrot.lane.b32.xlu1 %v847_v18, %s2499_s16 }
 0x2c1   : > { %v3031_v44 = vsel %vm731_vm6, %v3026_v62, %v730_v60  ;;  %v1304_v60 = vmul.f32 %v2949_v20, %v2680_v12 }
 0x2c2   : > { %990 = vrot.lane.b32.xlu2 %v982_v0, %s2498_s15  ;;  %v3034_v27 = vpop.permute.xlu2 %1397  ;;  %v1463_v0 = vmul.f32 %v2976_v22, %v2698_v26 }
 0x2c6   : > { %1312 = vrot.lane.b32.xlu0 %v1305_v32, %s2502_s20  ;;  %v746_v32 = vmul.f32 %v2850_v25, %v2698_v26 }
 0x2c8   : > { %v3043_v39 = vpop.permute.xlu1 %1049  ;;  %857 = vrot.lane.b32.xlu1 %v849_v36, %s2499_s16  ;;  %v764_v36 = vsel %vm421_vm0, %v2923_v47, %v2915_v41 }
 0x2ca   : > { %855 = vrot.lane.b32.xlu2 %v848_v2, %s2499_s16  ;;  %v745_v2 = vmul.f32 %v2850_v25, %v2689_v19 }
 0x2cb   : > { %v3047_v37 = vpop.permute.xlu2 %1578 }
 0x2cc   : > { %3730 = vst [vmem:[#allocation5_spill] sm:$0xff] %v3047_v37 }
 0x2ce   : > { %1469 = vrot.lane.b32.xlu0 %v1462_v14, %s2501_s18  ;;  %v1461_v14 = vmul.f32 %v2976_v22, %v2680_v12 }
 0x2d0   : > { %1157 = vrot.lane.b32.xlu1 %v1149_v45, %s2498_s15  ;;  %v770_v45 = vadd.f32 %v2915_v41, %v746_v32  ;;  %v1004_v41 = vmul.f32 %v2959_v34, %v2680_v12 }
 0x2d1   : > { %v3057_v49 = vpop.permute.xlu1 %1530 }
 0x2d2   : > { %1153 = vrot.lane.b32.xlu2 %v1147_v42, %s2498_s15  ;;  %v769_v42 = vadd.f32 %v764_v36, %v745_v2 }
 0x2d4   : > { %v923_v56 = vpop.permute.xlu2 %922 }
 0x2d5   : > { %v927_v24 = vmul.f32 %v923_v56, %v2698_v26  ;;  %v926_v32 = vmul.f32 %v923_v56, %v2689_v19 }
 0x2d6   : > { %1012 = vrot.lane.b32.xlu0 %v1005_v50, %s2503_s23  ;;  %v939_v1 = vpop.permute.xlu0 %938 }
 0x2d8   : > { %1314 = vrot.lane.b32.xlu1 %v1306_v57, %s2502_s20 }
 0x2da   : > { %1310 = vrot.lane.b32.xlu2 %v1304_v60, %s2502_s20  ;;  %v3070_v11 = vpop.permute.xlu1 %1554 }
 0x2db   : > { %3731 = vst [vmem:[#allocation6_spill] sm:$0xff] %v3070_v11  ;;  %v1006_v11 = vmul.f32 %v2959_v34, %v2698_v26 }
 0x2dc   : > { %v943_v54 = vpop.permute.xlu2 %942 }
 0x2dd   : > { %v3074_v18 = vadd.f32 %v943_v54, %v927_v24  ;;  %v1172_v24 = vmul.f32 %v2987_v48, %v2689_v19 }
 0x2de   : > { %879 = vrot.lane.b32.xlu0 %v872_v3, %s2504_s24  ;;  %v3079_v20 = vpop.permute.xlu0 %1089 }
 0x2df   : > { %v1092_v36 = vmul.f32 %v3079_v20, %v2680_v12 }
 0x2e0   : > { %1471 = vrot.lane.b32.xlu1 %v1463_v0, %s2501_s18  ;;  %v925_v0 = vmul.f32 %v923_v56, %v2680_v12  ;;  %v763_v56 = vsel %vm421_vm0, %v2910_v40, %v2923_v47 }
 0x2e2   : > { %1467 = vrot.lane.b32.xlu2 %v1461_v14, %s2501_s18  ;;  %v786_v50 = vpop.permute.xlu1 %785  ;;  %s2547_s18 = smov 122  }
 0x2e3   : > { %v788_v57 = vsel %vm444_vm1, %v784_v43, %v786_v50  ;;  %v794_v60 = vadd.f32 %v786_v50, %v770_v45 }
 0x2e4   : > { %v793_v3 = vadd.f32 %v788_v57, %v769_v42  ;;  %v808_v37 = vpop.permute.xlu2 %807  ;;  %v1329_v42 = vmul.f32 %v2969_v5, %v2689_v19 }
 0x2e6   : > { %1179 = vrot.lane.b32.xlu0 %v1172_v24, %s2503_s23  ;;  %v1108_v22 = vpop.permute.xlu0 %1107  ;;  %v744_v24 = vmul.f32 %v2850_v25, %v2680_v12 }
 0x2e8   : > { %1014 = vrot.lane.b32.xlu1 %v1006_v11, %s2503_s23  ;;  %v768_v40 = vadd.f32 %v763_v56, %v744_v24 }
 0x2ea   : > { %1010 = vrot.lane.b32.xlu2 %v1004_v41, %s2503_s23  ;;  %v941_v2 = vpop.permute.xlu1 %940 }
 0x2eb   : > { %v944_v14 = vsel %vm421_vm0, %v939_v1, %v941_v2  ;;  %v945_v45 = vsel %vm421_vm0, %v941_v2, %v943_v54  ;;  %v873_v1 = vmul.f32 %v2985_v46, %v2698_v26 }
 0x2ec   : > { %v949_v34 = vadd.f32 %v944_v14, %v925_v0  ;;  %v950_v50 = vadd.f32 %v945_v45, %v926_v32  ;;  %v1106_v57 = vpop.permute.xlu2 %1105  ;;  %v787_v0 = vsel %vm444_vm1, %v2931_v52, %v784_v43  ;;  %v871_v32 = vmul.f32 %v2985_v46, %v2680_v12 }
 0x2ed   : > { %v1111_v11 = vsel %vm421_vm0, %v1106_v57, %v1108_v22  ;;  %v792_v47 = vadd.f32 %v787_v0, %v768_v40  ;;  %v1173_v52 = vmul.f32 %v2987_v48, %v2698_v26  ;;  %v1171_v57 = vmul.f32 %v2987_v48, %v2680_v12 }
 0x2ee   : > { %v3119_v41 = vadd.f32 %v1111_v11, %v1092_v36  ;;  %1336 = vrot.lane.b32.xlu0 %v1329_v42, %s2498_s15  ;;  %v965_v54 = vpop.permute.xlu0 %964  ;;  %v1486_v36 = vmul.f32 %v3000_v59, %v2689_v19  ;;  %v1328_v40 = vmul.f32 %v2969_v5, %v2680_v12 }
 0x2f0   : > { %881 = vrot.lane.b32.xlu1 %v873_v1, %s2504_s24  ;;  %v1029_v1 = vmul.f32 %v2981_v53, %v2689_v19 }
 0x2f2   : > { %877 = vrot.lane.b32.xlu2 %v871_v32, %s2504_s24  ;;  %v806_v25 = vpop.permute.xlu1 %805  ;;  %v1330_v32 = vmul.f32 %v2969_v5, %v2698_v26 }
 0x2f3   : > { %v811_v2 = vsel %vm467_vm2, %v806_v25, %v808_v37 }
 0x2f4   : > { %v816_v14 = vadd.f32 %v811_v2, %v792_v47  ;;  %v963_v45 = vpop.permute.xlu2 %962  ;;  %v1196_v2 = vmul.f32 %v3002_v29, %v2689_v19 }
 0x2f5   : > { %v968_v42 = vsel %vm444_vm1, %v963_v45, %v965_v54 }
 0x2f6   : > { %v3134_v46 = vadd.f32 %v968_v42, %v949_v34  ;;  %1493 = vrot.lane.b32.xlu0 %v1486_v36, %s2502_s20  ;;  %v1487_v42 = vmul.f32 %v3000_v59, %v2698_v26 }
 0x2f7   : > { %v830_v43 = vpop.permute.xlu0 %829 }
 0x2f8   : > { %1181 = vrot.lane.b32.xlu1 %v1173_v52, %s2503_s23  ;;  %v1485_v52 = vmul.f32 %v3000_v59, %v2680_v12  ;;  %v1030_v12 = vmul.f32 %v2981_v53, %v2698_v26 }
 0x2fa   : > { %1177 = vrot.lane.b32.xlu2 %v1171_v57, %s2503_s23  ;;  %v810_v56 = vpop.permute.xlu1 %809 }
 0x2fb   : > { %v812_v11 = vsel %vm467_vm2, %v808_v37, %v810_v56  ;;  %v818_v24 = vadd.f32 %v810_v56, %v794_v60  ;;  %v1094_v37 = vmul.f32 %v3079_v20, %v2698_v26  ;;  %v1093_v60 = vmul.f32 %v3079_v20, %v2689_v19 }
 0x2fc   : > { %v817_v0 = vadd.f32 %v812_v11, %v793_v3  ;;  %v3144_v34 = vpop.permute.xlu2 %1270  ;;  %v1353_v11 = vmul.f32 %v3012_v16, %v2689_v19 }
 0x2fe   : > { %1036 = vrot.lane.b32.xlu0 %v1029_v1, %s2499_s16 }
 0x2ff   : > { %v1130_v48 = vpop.permute.xlu0 %1129 }
 0x300   : > { %1338 = vrot.lane.b32.xlu1 %v1330_v32, %s2498_s15 }
 0x302   : > { %1334 = vrot.lane.b32.xlu2 %v1328_v40, %s2498_s15  ;;  %v1110_v3 = vpop.permute.xlu1 %1109  ;;  %v3183_v40 = vld [vmem:[%s2677_s29] sm:$0xff] }
 0x303   : > { %v1112_v47 = vsel %vm421_vm0, %v1108_v22, %v1110_v3  ;;  %v1118_v25 = vadd.f32 %v1110_v3, %v1094_v37  ;;  %v1510_v3 = vmul.f32 %v2993_v51, %v2689_v19 }
 0x304   : > { %v1117_v36 = vadd.f32 %v1112_v47, %v1093_v60  ;;  %v834_v45 = vpop.permute.xlu2 %833 }
 0x305   : > { %v3160_v5 = vadd.f32 %v834_v45, %v818_v24 }
 0x306   : > { %1203 = vrot.lane.b32.xlu0 %v1196_v2, %s2499_s16 }
 0x307   : > { %v1287_v20 = vpop.permute.xlu0 %1286 }
 0x308   : > { %1495 = vrot.lane.b32.xlu1 %v1487_v42, %s2502_s20  ;;  %v1197_v42 = vmul.f32 %v3002_v29, %v2698_v26 }
 0x30a   : > { %1491 = vrot.lane.b32.xlu2 %v1485_v52, %s2502_s20  ;;  %v967_v22 = vpop.permute.xlu1 %966  ;;  %v3213_v52 = vld [vmem:[%s2677_s29 + $0x8] sm:$0xff] }
 0x30b   : > { %v969_v57 = vsel %vm444_vm1, %v965_v54, %v967_v22  ;;  %v975_v56 = vadd.f32 %v967_v22, %v3074_v18  ;;  %v1028_v18 = vmul.f32 %v3183_v40, %v2981_v53 }
 0x30c   : > { %v3173_v24 = vadd.f32 %v969_v57, %v950_v50  ;;  %v1134_v1 = vpop.permute.xlu2 %1133  ;;  %v1275_v50 = vmul.f32 %v3144_v34, %v2698_v26  ;;  %v1053_v26 = vmul.f32 %v3213_v52, %v3043_v39 }
 0x30d   : > { %v3175_v32 = vadd.f32 %v1134_v1, %v1118_v25 }
 0x30e   : > { %1360 = vrot.lane.b32.xlu0 %v1353_v11, %s2503_s23 }
 0x30f   : > { %v3180_v59 = vpop.permute.xlu0 %986 }
 0x310   : > { %1038 = vrot.lane.b32.xlu1 %v1030_v12, %s2499_s16  ;;  %v3225_v12 = vld [vmem:[%s2677_s29 + $0x10] sm:$0xff]  ;;  %s2544_s29 = smov 125  }
 0x312   : > { %1034 = vrot.lane.b32.xlu2 %v1028_v18, %s2499_s16  ;;  %v832_v54 = vpop.permute.xlu1 %831  ;;  %v1273_v18 = vmul.f32 %v3183_v40, %v3144_v34 }
 0x313   : > { %v835_v37 = vsel %vm490_vm3, %v830_v43, %v832_v54  ;;  %v836_v60 = vsel %vm490_vm3, %v832_v54, %v834_v45  ;;  %v1195_v45 = vmul.f32 %v3183_v40, %v3002_v29 }
 0x314   : > { %v3195_v47 = vadd.f32 %v835_v37, %v816_v14  ;;  %v3197_v25 = vadd.f32 %v836_v60, %v817_v0  ;;  %v1291_v53 = vpop.permute.xlu2 %1290 }
 0x315   : > { %v3199_v2 = vadd.f32 %v1291_v53, %v1275_v50 }
 0x316   : > { %1517 = vrot.lane.b32.xlu0 %v1510_v3, %s2498_s15 }
 0x317   : > { %v3204_v43 = vpop.permute.xlu0 %1451 }
 0x318   : > { %1205 = vrot.lane.b32.xlu1 %v1197_v42, %s2499_s16  ;;  %v1511_v42 = vmul.f32 %v3225_v12, %v2993_v51 }
 0x31a   : > { %1201 = vrot.lane.b32.xlu2 %v1195_v45, %s2499_s16  ;;  %v1132_v19 = vpop.permute.xlu1 %1131 }
 0x31b   : > { %v1135_v14 = vsel %vm444_vm1, %v1130_v48, %v1132_v19  ;;  %v1136_v0 = vsel %vm444_vm1, %v1132_v19, %v1134_v1  ;;  %v1354_v48 = vmul.f32 %v3225_v12, %v3012_v16  ;;  %v1352_v1 = vmul.f32 %v3183_v40, %v3012_v16 }
 0x31c   : > { %v3218_v22 = vadd.f32 %v1135_v14, %v3119_v41  ;;  %v3220_v57 = vadd.f32 %v1136_v0, %v1117_v36  ;;  %v991_v29 = vpop.permute.xlu2 %990  ;;  %v1274_v41 = vmul.f32 %v3213_v52, %v3144_v34  ;;  %v1220_v16 = vmul.f32 %v3213_v52, %v3015_v17 }
 0x31d   : > { %v3222_v11 = vadd.f32 %v991_v29, %v975_v56  ;;  %v364_v56 = vlaneseq  ;;  %v423_v0 = vsel %vm421_vm0, %v2757_v61, %v2761_v63  ;;  %v446_v63 = vsel %vm444_vm1, %v2767_v4, %v2788_v15 }
 0x31e   : > { %1060 = vrot.lane.b32.xlu0 %v1053_v26, %s2504_s24  ;;  %v422_v26 = vsel %vm421_vm0, %v2780_v10, %v2757_v61  ;;  %v1377_v61 = vmul.f32 %v3213_v52, %v3036_v28 }
 0x31f   : > { %v365_v45 = vand.u32 127, %v364_v56 }
 0x320   : > { %v3236_v36 = vpop.permute.xlu0 %394  ;;  %1362 = vrot.lane.b32.xlu1 %v1354_v48, %s2503_s23  ;;  %v445_v48 = vsel %vm444_vm1, %v2784_v13, %v2767_v4  ;;  %v469_v4 = vsel %vm467_vm2, %v2792_v21, %v2772_v6  ;;  %v1052_v6 = vmul.f32 %v3183_v40, %v3043_v39 }
 0x321   : > { %v3288_v15 = vand.u32 15, %v365_v45 }
 0x322   : > { %1358 = vrot.lane.b32.xlu2 %v1352_v1, %s2503_s23  ;;  %v1289_v50 = vpop.permute.xlu1 %1288 }
 0x323   : > { %v1292_v54 = vsel %vm421_vm0, %v1287_v20, %v1289_v50  ;;  %v1293_v37 = vsel %vm421_vm0, %v1289_v50, %v1291_v53  ;;  %v1509_v20 = vmul.f32 %v3183_v40, %v2993_v51  ;;  %v366_v51 = vadd.s32 128, %v365_v45 }
 0x324   : > { %v3244_v60 = vadd.f32 %v1292_v54, %v1273_v18  ;;  %v3246_v3 = vadd.f32 %v1293_v37, %v1274_v41  ;;  %v3248_v34 = vpop.permute.xlu2 %855  ;;  %v543_v45 = vadd.s32 4294967293, %v3288_v15 }
 0x326   : > { %1227 = vrot.lane.b32.xlu0 %v1220_v16, %s2504_s24  ;;  %v3290_v16 = vand.u32 15, %v366_v51  ;;  %vm545_vm7 = vcmp.ge.s32.totalorder %v543_v45, 0 }
 0x328   : > { %v401_v19 = vpop.permute.xlu0 %400  ;;  %1519 = vrot.lane.b32.xlu1 %v1511_v42, %s2498_s15 }
 0x329   : > { %v403_v53 = vmul.f32 %v3183_v40, %v401_v19  ;;  %v404_v14 = vmul.f32 %v3213_v52, %v401_v19  ;;  %v544_v19 = vadd.s32 4294967293, %v3290_v16 }
 0x32a   : > { %1515 = vrot.lane.b32.xlu2 %v1509_v20, %s2498_s15  ;;  %v989_v1 = vpop.permute.xlu1 %988  ;;  %v492_v20 = vsel %vm490_vm3, %v2774_v7, %v2803_v30  ;;  %v710_v30 = vadd.s32 4294967294, %v3288_v15  ;;  %s2545_s15 = smov 124  }
 0x32b   : > { %v426_v18 = vadd.f32 %v422_v26, %v403_v53  ;;  %v427_v41 = vadd.f32 %v423_v0, %v404_v14  ;;  %v992_v56 = vsel %vm467_vm2, %v3180_v59, %v989_v1  ;;  %v993_v50 = vsel %vm467_vm2, %v989_v1, %v991_v29 }
 0x32c   : > { %v3277_v10 = vadd.f32 %v992_v56, %v3134_v46  ;;  %v3280_v13 = vadd.f32 %v993_v50, %v3173_v24  ;;  %v1154_v54 = vpop.permute.xlu2 %1153  ;;  %v468_v59 = vsel %vm467_vm2, %v2747_v55, %v2792_v21  ;;  %v1054_v46 = vmul.f32 %v3225_v12, %v3043_v39 }
 0x32d   : > { %v449_v37 = vadd.f32 %v445_v48, %v426_v18  ;;  %v450_v29 = vadd.f32 %v446_v63, %v427_v41  ;;  %v491_v24 = vsel %vm490_vm3, %v2796_v23, %v2774_v7  ;;  %v514_v23 = vsel %vm513_vm4, %v2751_v58, %v2809_v31 }
 0x32e   : > { %1384 = vrot.lane.b32.xlu0 %v1377_v61, %s2499_s16  ;;  %v515_v7 = vsel %vm513_vm4, %v2809_v31, %v2776_v8  ;;  %v711_v39 = vadd.s32 4294967294, %v3290_v16  ;;  %v537_v58 = vsel %vm536_vm5, %v2813_v33, %v2778_v9  ;;  %v538_v8 = vsel %vm536_vm5, %v2778_v9, %v2816_v35 }
 0x32f   : > { %v472_v55 = vadd.f32 %v468_v59, %v449_v37  ;;  %v473_v42 = vadd.f32 %v469_v4, %v450_v29  ;;  %v1534_v31 = vmul.f32 %v3213_v52, %v3057_v49  ;;  %vm546_vm8 = vcmp.ge.s32.totalorder %v544_v19, 0 }
 0x330   : > { %v1156_v21 = vpop.permute.xlu0 %1155  ;;  %1062 = vrot.lane.b32.xlu1 %v1054_v46, %s2504_s24  ;;  %v1221_v56 = vmul.f32 %v3225_v12, %v3015_v17  ;;  %vm712_vm9 = vcmp.ge.s32.totalorder %v710_v30, 0  ;;  %vm713_vm10 = vcmp.ge.s32.totalorder %v711_v39, 0  ;;  %v732_v33 = vsel %vm731_vm6, %v3017_v38, %v3026_v62 }
 0x331   : > { %v495_v53 = vadd.f32 %v491_v24, %v472_v55  ;;  %v496_v14 = vadd.f32 %v492_v20, %v473_v42  ;;  %v1159_v0 = vsel %vm467_vm2, %v1154_v54, %v1156_v21  ;;  %v1219_v50 = vmul.f32 %v3183_v40, %v3015_v17 }
 0x332   : > { %v3316_v26 = vadd.f32 %v1159_v0, %v3218_v22  ;;  %1058 = vrot.lane.b32.xlu2 %v1052_v6, %s2504_s24  ;;  %v3319_v48 = vpop.permute.xlu1 %853  ;;  %v736_v59 = vsel %vm712_vm9, %v732_v33, 0.0  ;;  %v737_v37 = vsel %vm713_vm10, %v3031_v44, 0.0  ;;  %v1401_v46 = vmul.f32 %v3213_v52, %v3034_v27 }
 0x333   : > { %v518_v51 = vadd.f32 %v514_v23, %v495_v53  ;;  %v519_v1 = vadd.f32 %v515_v7, %v496_v14  ;;  %v1378_v44 = vmul.f32 %v3225_v12, %v3036_v28  ;;  %v1454_v24 = vmul.f32 %v3183_v40, %v3204_v43  ;;  %v3732_v23 = vld [vmem:[#allocation6_spill] sm:$0xff] }
 0x334   : > { %v1311_v18 = vpop.permute.xlu2 %1310  ;;  %v1535_v0 = vmul.f32 %v3225_v12, %v3057_v49  ;;  %v1533_v7 = vmul.f32 %v3183_v40, %v3057_v49  ;;  %vm1622_vm6 = vcmask 998400  }
 0x335   : > { %v541_v22 = vadd.f32 %v537_v58, %v518_v51  ;;  %v542_v41 = vadd.f32 %v538_v8, %v519_v1  ;;  %v3733_v51 = vld [vmem:[#allocation5_spill] sm:$0xff] }
 0x336   : > { %1541 = vrot.lane.b32.xlu0 %v1534_v31, %s2503_s23  ;;  %v1582_v1 = vmul.f32 %v3213_v52, %v3733_v51  ;;  %v1402_v31 = vmul.f32 %v3225_v12, %v3034_v27 }
 0x337   : > { %v555_v9 = vsel %vm545_vm7, %v541_v22, 0.0  ;;  %v556_v35 = vsel %vm546_vm8, %v542_v41, 0.0  ;;  %v1455_v22 = vmul.f32 %v3213_v52, %v3204_v43 }
 0x338   : > { %v1313_v63 = vpop.permute.xlu0 %1312  ;;  %1229 = vrot.lane.b32.xlu1 %v1221_v56, %s2504_s24  ;;  %v557_v61 = vadd.f32 %v555_v9, %v3236_v36  ;;  %v558_v54 = vadd.f32 %v556_v35, %v3236_v36  ;;  %v1557_v35 = vmul.f32 %v3183_v40, %v3732_v23 }
 0x339   : > { %v1316_v29 = vsel %vm444_vm1, %v1311_v18, %v1313_v63 }
 0x33a   : > { %v3343_v38 = vadd.f32 %v1316_v29, %v3244_v60  ;;  %1225 = vrot.lane.b32.xlu2 %v1219_v50, %s2504_s24  ;;  %v3346_v62 = vpop.permute.xlu1 %857  ;;  %v3348_v17 = vadd.f32 %v736_v59, %v557_v61  ;;  %v3350_v4 = vadd.f32 %v737_v37, %v558_v54  ;;  %v1376_v60 = vmul.f32 %v3183_v40, %v3036_v28 }
 0x33b   : > { %v1558_v28 = vmul.f32 %v3213_v52, %v3732_v23  ;;  %v1583_v37 = vmul.f32 %v3225_v12, %v3733_v51  ;;  %v860_v29 = vsel %vm513_vm4, %v3248_v34, %v3346_v62 }
 0x33c   : > { %v1468_v36 = vpop.permute.xlu2 %1467 }
 0x33e   : > { %1408 = vrot.lane.b32.xlu0 %v1401_v46, %s2504_s24  ;;  %v1581_v46 = vmul.f32 %v3183_v40, %v3733_v51 }
 0x340   : > { %v1470_v55 = vpop.permute.xlu0 %1469  ;;  %1386 = vrot.lane.b32.xlu1 %v1378_v44, %s2499_s16  ;;  %v865_v44 = vadd.f32 %v860_v29, %v3197_v25 }
 0x341   : > { %v1473_v42 = vsel %vm421_vm0, %v1468_v36, %v1470_v55 }
 0x342   : > { %v3363_v20 = vadd.f32 %v1473_v42, %v1454_v24  ;;  %1382 = vrot.lane.b32.xlu2 %v1376_v60, %s2499_s16  ;;  %v1158_v6 = vpop.permute.xlu1 %1157  ;;  %v859_v24 = vsel %vm513_vm4, %v3319_v48, %v3248_v34  ;;  %v866_v42 = vadd.f32 %v3346_v62, %v3160_v5 }
 0x343   : > { %v1160_v45 = vsel %vm467_vm2, %v1156_v21, %v1158_v6  ;;  %v3368_v19 = vadd.f32 %v1158_v6, %v3175_v32  ;;  %v864_v25 = vadd.f32 %v859_v24, %v3195_v47 }
 0x344   : > { %v3373_v53 = vadd.f32 %v1160_v45, %v3220_v57  ;;  %v1011_v14 = vpop.permute.xlu2 %1010 }
 0x346   : > { %1565 = vrot.lane.b32.xlu0 %v1558_v28, %s2499_s16 }
 0x348   : > { %v1013_v30 = vpop.permute.xlu0 %1012  ;;  %1543 = vrot.lane.b32.xlu1 %v1535_v0, %s2503_s23 }
 0x349   : > { %v1016_v32 = vsel %vm490_vm3, %v1011_v14, %v1013_v30 }
 0x34a   : > { %v3383_v21 = vadd.f32 %v1016_v32, %v3277_v10  ;;  %1539 = vrot.lane.b32.xlu2 %v1533_v7, %s2503_s23  ;;  %v1315_v57 = vpop.permute.xlu1 %1314  ;;  %v1400_v10 = vmul.f32 %v3183_v40, %v3034_v27  ;;  %v1559_v27 = vmul.f32 %v3225_v12, %v3732_v23  ;;  %s2194_s23 = sshll.u32 %s2477_s12, 4 }
 0x34b   : > { %v1317_v39 = vsel %vm444_vm1, %v1313_v63, %v1315_v57  ;;  %v1323_v58 = vadd.f32 %v1315_v57, %v3199_v2  ;;  %v1456_v2 = vmul.f32 %v3225_v12, %v3204_v43  ;;  %s2082_s26 = scalar_lea.hbm %s3725_s9, %s2194_s23 }
 0x34c   : > { %v1322_v49 = vadd.f32 %v1317_v39, %v3246_v3  ;;  %v878_v8 = vpop.permute.xlu2 %877 }
 0x34e   : > { %1589 = vrot.lane.b32.xlu0 %v1582_v1, %s2504_s24 }
 0x350   : > { %v880_v18 = vpop.permute.xlu0 %879  ;;  %1410 = vrot.lane.b32.xlu1 %v1402_v31, %s2504_s24 }
 0x351   : > { %v883_v23 = vsel %vm536_vm5, %v878_v8, %v880_v18 }
 0x352   : > { %1406 = vrot.lane.b32.xlu2 %v1400_v10, %s2504_s24  ;;  %v1472_v3 = vpop.permute.xlu1 %1471  ;;  %v888_v28 = vadd.f32 %v883_v23, %v864_v25 }
 0x353   : > { %v1474_v41 = vsel %vm421_vm0, %v1470_v55, %v1472_v3  ;;  %v1480_v56 = vadd.f32 %v1472_v3, %v1456_v2  ;;  %vm1441_vm0 = vcmask 1006592  }
 0x354   : > { %v1479_v33 = vadd.f32 %v1474_v41, %v1455_v22  ;;  %v3403_v9 = vpop.permute.xlu2 %1177 }
 0x358   : > { %v3409_v50 = vpop.permute.xlu0 %1179  ;;  %1567 = vrot.lane.b32.xlu1 %v1559_v27, %s2499_s16 }
 0x35a   : > { %1563 = vrot.lane.b32.xlu2 %v1557_v35, %s2499_s16  ;;  %v1015_v43 = vpop.permute.xlu1 %1014  ;;  %s2546_s16 = smov 123  }
 0x35b   : > { %v1017_v63 = vsel %vm490_vm3, %v1013_v30, %v1015_v43  ;;  %v3415_v61 = vadd.f32 %v1015_v43, %v3222_v11 }
 0x35c   : > { %v3418_v54 = vadd.f32 %v1017_v63, %v3280_v13  ;;  %v1335_v59 = vpop.permute.xlu2 %1334 }
 0x360   : > { %v1337_v36 = vpop.permute.xlu0 %1336  ;;  %1591 = vrot.lane.b32.xlu1 %v1583_v37, %s2504_s24 }
 0x361   : > { %v1340_v11 = vsel %vm467_vm2, %v1335_v59, %v1337_v36 }
 0x362   : > { %v3431_v13 = vadd.f32 %v1340_v11, %v3343_v38  ;;  %1587 = vrot.lane.b32.xlu2 %v1581_v46, %s2504_s24  ;;  %v882_v60 = vpop.permute.xlu1 %881 }
 0x363   : > { %v884_v55 = vsel %vm536_vm5, %v880_v18, %v882_v60  ;;  %v890_v38 = vadd.f32 %v882_v60, %v866_v42 }
 0x364   : > { %v889_v6 = vadd.f32 %v884_v55, %v865_v44  ;;  %v1492_v45 = vpop.permute.xlu2 %1491 }
 0x366   : > { %908 = vrot.lane.b32.xlu0 %v889_v6, %s2543_s28 }
 0x368   : > { %v1494_v14 = vpop.permute.xlu0 %1493  ;;  %910 = vrot.lane.b32.xlu1 %v890_v38, %s2543_s28 }
 0x369   : > { %v1497_v0 = vsel %vm444_vm1, %v1492_v45, %v1494_v14 }
 0x36a   : > { %v3444_v34 = vadd.f32 %v1497_v0, %v3363_v20  ;;  %906 = vrot.lane.b32.xlu2 %v888_v28, %s2543_s28  ;;  %v1182_v48 = vpop.permute.xlu1 %1181 }
 0x36b   : > { %v1184_v5 = vsel %vm490_vm3, %v3409_v50, %v1182_v48  ;;  %v1190_v28 = vadd.f32 %v1182_v48, %v3368_v19 }
 0x36c   : > { %v1189_v62 = vadd.f32 %v1184_v5, %v3373_v53  ;;  %v1035_v7 = vpop.permute.xlu2 %1034 }
 0x370   : > { %v1037_v47 = vpop.permute.xlu0 %1036 }
 0x372   : > { %v1339_v30 = vpop.permute.xlu1 %1338 }
 0x373   : > { %v1341_v32 = vsel %vm467_vm2, %v1337_v36, %v1339_v30  ;;  %v3450_v57 = vadd.f32 %v1339_v30, %v1323_v58  ;;  %v1040_v58 = vsel %vm513_vm4, %v1035_v7, %v1037_v47 }
 0x374   : > { %v3452_v39 = vadd.f32 %v1341_v32, %v1322_v49  ;;  %v1202_v51 = vpop.permute.xlu2 %1201  ;;  %v1045_v49 = vadd.f32 %v1040_v58, %v3383_v21 }
 0x378   : > { %v1204_v1 = vpop.permute.xlu0 %1203 }
 0x379   : > { %v1207_v37 = vsel %vm513_vm4, %v1202_v51, %v1204_v1 }
 0x37a   : > { %v1496_v20 = vpop.permute.xlu1 %1495 }
 0x37b   : > { %v1498_v8 = vsel %vm444_vm1, %v1494_v14, %v1496_v20  ;;  %v3455_v31 = vadd.f32 %v1496_v20, %v1480_v56  ;;  %v1183_v56 = vsel %vm490_vm3, %v3403_v9, %v3409_v50 }
 0x37c   : > { %v1503_v10 = vadd.f32 %v1498_v8, %v1479_v33  ;;  %v1359_v18 = vpop.permute.xlu2 %1358  ;;  %v1188_v29 = vadd.f32 %v1183_v56, %v3316_v26 }
 0x37e   : > { %v1212_v46 = vadd.f32 %v1207_v37, %v1188_v29 }
 0x380   : > { %v3457_v2 = vpop.permute.xlu0 %1360 }
 0x382   : > { %v1039_v53 = vpop.permute.xlu1 %1038 }
 0x383   : > { %v1041_v50 = vsel %vm513_vm4, %v1037_v47, %v1039_v53  ;;  %v1047_v26 = vadd.f32 %v1039_v53, %v3415_v61  ;;  %v1364_v61 = vsel %vm490_vm3, %v1359_v18, %v3457_v2 }
 0x384   : > { %v1516_v22 = vpop.permute.xlu2 %1515  ;;  %v1046_v42 = vadd.f32 %v1041_v50, %v3418_v54  ;;  %v1369_v8 = vadd.f32 %v1364_v61, %v3431_v13 }
 0x388   : > { %v1518_v3 = vpop.permute.xlu0 %1517 }
 0x38a   : > { %v1206_v41 = vpop.permute.xlu1 %1205 }
 0x38b   : > { %v1208_v14 = vsel %vm513_vm4, %v1204_v1, %v1206_v41  ;;  %v1214_v5 = vadd.f32 %v1206_v41, %v1190_v28  ;;  %v1521_v41 = vsel %vm467_vm2, %v1516_v22, %v1518_v3  ;;  %v1717_v28 = vld [vmem:[%s3722_s6 + $0x8] sm:$0xff] }
 0x38c   : > { %v1059_v27 = vpop.permute.xlu2 %1058  ;;  %v1213_v7 = vadd.f32 %v1208_v14, %v1189_v62 }
 0x390   : > { %v1061_v35 = vpop.permute.xlu0 %1060 }
 0x391   : > { %v1064_v43 = vsel %vm536_vm5, %v1059_v27, %v1061_v35 }
 0x392   : > { %v1069_v63 = vadd.f32 %v1064_v43, %v1045_v49  ;;  %v1363_v59 = vpop.permute.xlu1 %1362  ;;  %v1526_v49 = vadd.f32 %v1521_v41, %v3444_v34  ;;  %v1421_v41 = vadd.s32 2, %v3290_v16 }
 0x393   : > { %v1365_v13 = vsel %vm490_vm3, %v3457_v2, %v1363_v59 }
 0x394   : > { %v1226_v33 = vpop.permute.xlu2 %1225  ;;  %1075 = vrot.lane.b32.xlu2 %v1069_v63, %s2544_s29  ;;  %v1371_v63 = vadd.f32 %v1363_v59, %v3450_v57 }
 0x398   : > { %v1228_v36 = vpop.permute.xlu0 %1227 }
 0x399   : > { %v1231_v21 = vsel %vm536_vm5, %v1226_v33, %v1228_v36  ;;  %v1370_v33 = vadd.f32 %v1365_v13, %v3452_v39 }
 0x39a   : > { %v1236_v11 = vadd.f32 %v1231_v21, %v1212_v46  ;;  %v3468_v44 = vpop.permute.xlu1 %1519 }
 0x39b   : > { %v1522_v60 = vsel %vm467_vm2, %v1518_v3, %v3468_v44  ;;  %v1528_v39 = vadd.f32 %v3468_v44, %v3455_v31  ;;  %v1702_v31 = vld [vmem:[%s3720_s4] sm:$0xff] }
 0x39c   : > { %v3472_v24 = vadd.f32 %v1522_v60, %v1503_v10  ;;  %v1383_v9 = vpop.permute.xlu2 %1382  ;;  %1254 = vrot.lane.b32.xlu2 %v1236_v11, %s2545_s15  ;;  %v2015_v44 = vld [vmem:[%s3724_s8] sm:$0xff] }
 0x3a0   : > { %v1385_v55 = vpop.permute.xlu0 %1384 }
 0x3a1   : > { %v1388_v20 = vsel %vm513_vm4, %v1383_v9, %v1385_v55 }
 0x3a2   : > { %v1063_v6 = vpop.permute.xlu1 %1062  ;;  %v1393_v19 = vadd.f32 %v1388_v20, %v1369_v8 }
 0x3a3   : > { %v1065_v45 = vsel %vm536_vm5, %v1061_v35, %v1063_v6  ;;  %v1071_v23 = vadd.f32 %v1063_v6, %v1047_v26 }
 0x3a4   : > { %v1070_v25 = vadd.f32 %v1065_v45, %v1046_v42  ;;  %v1540_v38 = vpop.permute.xlu2 %1539 }
 0x3a5   : > { %1079 = vrot.lane.b32.xlu1 %v1071_v23, %s2544_s29 }
 0x3a6   : > { %1077 = vrot.lane.b32.xlu0 %v1070_v25, %s2544_s29  ;;  %s2549_s29 = smov 77  }
 0x3a8   : > { %v1542_v0 = vpop.permute.xlu0 %1541 }
 0x3a9   : > { %v1545_v58 = vsel %vm490_vm3, %v1540_v38, %v1542_v0  ;;  %v1719_v38 = vld [vmem:[%s3722_s6 + $0x18] sm:$0xff] }
 0x3aa   : > { %v1230_v47 = vpop.permute.xlu1 %1229  ;;  %v1550_v43 = vadd.f32 %v1545_v58, %v1526_v49 }
 0x3ab   : > { %v1232_v54 = vsel %vm536_vm5, %v1228_v36, %v1230_v47  ;;  %v1238_v30 = vadd.f32 %v1230_v47, %v1214_v5 }
 0x3ac   : > { %v1237_v32 = vadd.f32 %v1232_v54, %v1213_v7  ;;  %v1407_v51 = vpop.permute.xlu2 %1406  ;;  %v891_v54 = vadd.s32 4294967295, %v3288_v15 }
 0x3ad   : > { %1258 = vrot.lane.b32.xlu1 %v1238_v30, %s2545_s15  ;;  %v892_v30 = vadd.s32 4294967295, %v3290_v16 }
 0x3ae   : > { %1256 = vrot.lane.b32.xlu0 %v1237_v32, %s2545_s15  ;;  %vm893_vm12 = vcmp.ge.s32.totalorder %v891_v54, 0 }
 0x3af   : > { %vm894_vm13 = vcmp.ge.s32.totalorder %v892_v30, 0 }
 0x3b0   : > { %v1409_v48 = vpop.permute.xlu0 %1408 }
 0x3b1   : > { %v1412_v1 = vsel %vm536_vm5, %v1407_v51, %v1409_v48 }
 0x3b2   : > { %v1417_v62 = vadd.f32 %v1412_v1, %v1393_v19  ;;  %v1387_v10 = vpop.permute.xlu1 %1386 }
 0x3b3   : > { %v1389_v56 = vsel %vm513_vm4, %v1385_v55, %v1387_v10  ;;  %v1395_v3 = vadd.f32 %v1387_v10, %v1371_v63  ;;  %v1240_v10 = vadd.s32 1, %v3290_v16 }
 0x3b4   : > { %1435 = vrot.lane.b32.xlu2 %v1417_v62, %s2546_s16  ;;  %v1564_v18 = vpop.permute.xlu2 %1563  ;;  %v1394_v36 = vadd.f32 %v1389_v56, %v1370_v33  ;;  %v1239_v62 = vadd.s32 1, %v3288_v15 }
 0x3b5   : > { %vm1244_vm2 = vcmp.lt.s32.totalorder %v1240_v10, 16 }
 0x3b6   : > { %vm1243_vm1 = vcmp.lt.s32.totalorder %v1239_v62, 16 }
 0x3b8   : > { %v1566_v53 = vpop.permute.xlu0 %1565 }
 0x3b9   : > { %v1569_v35 = vsel %vm513_vm4, %v1564_v18, %v1566_v53  ;;  %v2548_v18 = vmov 8.0  }
 0x3ba   : > { %v1544_v27 = vpop.permute.xlu1 %1543  ;;  %v1574_v37 = vadd.f32 %v1569_v35, %v1550_v43  ;;  %2366 = vrcp.f32 %v2548_v18 }
 0x3bb   : > { %v1546_v59 = vsel %vm490_vm3, %v1542_v0, %v1544_v27  ;;  %v1552_v9 = vadd.f32 %v1544_v27, %v1528_v39 }
 0x3bc   : > { %v1588_v29 = vpop.permute.xlu2 %1587  ;;  %v1551_v55 = vadd.f32 %v1546_v59, %v3472_v24  ;;  %v1694_v24 = vld [vmem:[%s3719_s3] sm:$0xff] }
 0x3c0   : > { %v1590_v22 = vpop.permute.xlu0 %1589 }
 0x3c1   : > { %v1593_v46 = vsel %vm536_vm5, %v1588_v29, %v1590_v22 }
 0x3c2   : > { %v1598_v34 = vadd.f32 %v1593_v46, %v1574_v37  ;;  %v1411_v21 = vpop.permute.xlu1 %1410  ;;  %v2367_v37 = vpop.eup %2366 }
 0x3c3   : > { %v1413_v2 = vsel %vm536_vm5, %v1409_v48, %v1411_v21  ;;  %v1419_v11 = vadd.f32 %v1411_v21, %v1395_v3  ;;  %v1601_v3 = vadd.s32 3, %v3288_v15  ;;  %vm1648_vm9 = vweird.f32 %v2367_v37 }
 0x3c4   : > { %v1418_v60 = vadd.f32 %v1413_v2, %v1394_v36  ;;  %1616 = vrot.lane.b32.xlu2 %v1598_v34, %s2547_s18  ;;  %v907_v0 = vpop.permute.xlu2 %906 }
 0x3c5   : > { %1439 = vrot.lane.b32.xlu1 %v1419_v11, %s2546_s16  ;;  %v1644_v11 = vmul.f32 8.0, %v2367_v37  ;;  %vm1605_vm7 = vcmp.lt.s32.totalorder %v1601_v3, 16  ;;  %v1716_v3 = vld [vmem:[%s3722_s6] sm:$0xff] }
 0x3c6   : > { %1437 = vrot.lane.b32.xlu0 %v1418_v60, %s2546_s16 }
 0x3ca   : > { %v1568_v57 = vpop.permute.xlu1 %1567 }
 0x3cb   : > { %v1570_v50 = vsel %vm513_vm4, %v1566_v53, %v1568_v57  ;;  %v1576_v26 = vadd.f32 %v1568_v57, %v1552_v9  ;;  %v1420_v53 = vadd.s32 2, %v3288_v15  ;;  %vm1425_vm4 = vcmp.lt.s32.totalorder %v1421_v41, 16 }
 0x3cc   : > { %v1575_v42 = vadd.f32 %v1570_v50, %v1551_v55  ;;  %1697 = vperm.xlu2 %2364, %v1694_v24  }
 0x3cd   : > { %vm1424_vm3 = vcmp.lt.s32.totalorder %v1420_v53, 16 }
 0x3d2   : > { %v1592_v6 = vpop.permute.xlu1 %1591 }
 0x3d3   : > { %v1594_v45 = vsel %vm536_vm5, %v1590_v22, %v1592_v6  ;;  %v1600_v23 = vadd.f32 %v1592_v6, %v1576_v26  ;;  %v1645_v6 = vsub.f32 1.0, %v1644_v11 }
 0x3d4   : > { %v1599_v25 = vadd.f32 %v1594_v45, %v1575_v42  ;;  %1737 = vperm.xlu2 %2364, %v1719_v38  }
 0x3d5   : > { %1620 = vrot.lane.b32.xlu1 %v1600_v23, %s2547_s18 }
 0x3d6   : > { %1618 = vrot.lane.b32.xlu0 %v1599_v25, %s2547_s18  ;;  %s347_s18 = sand.u32 1, %s2469_s10  }
 0x3d7   : > { %s2171_s20 = sshll.u32 %s347_s18, 4  ;;  %s2069_s12 = scalar_lea.sflag [#allocation3], %s347_s18 }
 0x3d8   : > { %v909_v5 = vpop.permute.xlu0 %908  ;;  %s349_s27 = scalar_lea.vmem [#allocation2], %s2171_s20  ;;  %s2427_s20 = scalar_lea.hbm %s3725_s9, 32 }
 0x3d9   : > { %v913_v8 = vsel %vm912_vm11, %v907_v0, %v909_v5  ;;  %s2084_s28 = sshll.u32 %s349_s27, 4  ;;  %s2085_s28 = int_to_ptr.vmem [resolvable:$true] %s2084_s28 }
 0x3da   : > { %v911_v14 = vpop.permute.xlu1 %910  ;;  %v917_v48 = vsel %vm893_vm12, %v913_v8, 0.0 }
 0x3db   : > { %v914_v19 = vsel %vm912_vm11, %v909_v5, %v911_v14  ;;  %v919_v58 = vadd.f32 %v917_v48, %v3348_v17  ;;  %v1602_v17 = vadd.s32 3, %v3290_v16 }
 0x3dc   : > { %1727 = vperm.xlu2 %2364, %v1717_v28   ;;  %v918_v1 = vsel %vm894_vm13, %v914_v19, 0.0 }
 0x3dd   : > { %v920_v49 = vadd.f32 %v918_v1, %v3350_v4  ;;  %vm1606_vm8 = vcmp.lt.s32.totalorder %v1602_v17, 16 }
 0x3de   : > { %1705 = vperm.xlu0 %2363, %v1702_v31  }
 0x3e4   : > { %2055 = vrot.lane.b32.xlu2 %v3213_v52, %s2549_s29 }
 0x3e6   : > { %2018 = vperm.xlu0 %2363, %v2015_v44   ;;  %v1646_v44 = vmul.f32 %v2367_v37, %v1645_v6 }
 0x3e8   : > { %v1647_v0 = vadd.f32 %v2367_v37, %v1646_v44 }
 0x3ea   : > { %v1649_v54 = vsel %vm1648_vm9, %v2367_v37, %v1647_v0 }
 0x3ee   : > { %v1076_v47 = vpop.permute.xlu2 %1075  ;;  %2057 = vrot.lane.b32.xlu0 %v3225_v12, %s2549_s29 }
 0x3f6   : > { %v1255_v51 = vpop.permute.xlu2 %1254 }
 0x40e   : > { %v1436_v13 = vpop.permute.xlu2 %1435 }
 0x417   : > { %v1080_v7 = vpop.permute.xlu1 %1079 }
 0x418   : > { %v1078_v61 = vpop.permute.xlu0 %1077 }
 0x419   : > { %v1082_v56 = vsel %vm1081_vm15, %v1076_v47, %v1078_v61  ;;  %v1083_v33 = vsel %vm1081_vm15, %v1078_v61, %v1080_v7 }
 0x41a   : > { %v1086_v36 = vadd.f32 %v1082_v56, %v919_v58  ;;  %v1087_v34 = vadd.f32 %v1083_v33, %v920_v49 }
 0x41e   : > { %v1617_v59 = vpop.permute.xlu2 %1616 }
 0x41f   : > { %v1259_v32 = vpop.permute.xlu1 %1258 }
 0x420   : > { %v1257_v20 = vpop.permute.xlu0 %1256 }
 0x421   : > { %v1261_v43 = vsel %vm1260_vm14, %v1255_v51, %v1257_v20  ;;  %v1262_v63 = vsel %vm1260_vm14, %v1257_v20, %v1259_v32 }
 0x422   : > { %v1265_v46 = vsel %vm1243_vm1, %v1261_v43, 0.0  ;;  %v1266_v4 = vsel %vm1244_vm2, %v1262_v63, 0.0  ;;  %vm1750_vm1 = vcmask 64512  }
 0x423   : > { %v1267_v60 = vadd.f32 %v1265_v46, %v1086_v36  ;;  %v1268_v57 = vadd.f32 %v1266_v4, %v1087_v34 }
 0x437   : > { %v1440_v27 = vpop.permute.xlu1 %1439 }
 0x438   : > { %v1438_v35 = vpop.permute.xlu0 %1437 }
 0x439   : > { %v1442_v29 = vsel %vm1441_vm0, %v1436_v13, %v1438_v35  ;;  %v1443_v22 = vsel %vm1441_vm0, %v1438_v35, %v1440_v27  ;;  %vm1757_vm0 = vcmask 1043456  }
 0x43a   : > { %v1446_v21 = vsel %vm1424_vm3, %v1442_v29, 0.0  ;;  %v1447_v2 = vsel %vm1425_vm4, %v1443_v22, 0.0  ;;  %v1718_v22 = vld [vmem:[%s3722_s6 + $0x10] sm:$0xff] }
 0x43b   : > { %v1448_v50 = vadd.f32 %v1446_v21, %v1267_v60  ;;  %v1449_v55 = vadd.f32 %v1447_v2, %v1268_v57  ;;  %1732 = vperm.xlu1 %2365, %v1718_v22  }
 0x443   : > { %1722 = vperm.xlu1 %2365, %v1716_v3  }
 0x447   : > { %v1621_v39 = vpop.permute.xlu1 %1620 }
 0x448   : > { %v1619_v9 = vpop.permute.xlu0 %1618 }
 0x449   : > { %v1623_v15 = vsel %vm1622_vm6, %v1617_v59, %v1619_v9  ;;  %v1624_v26 = vsel %vm1622_vm6, %v1619_v9, %v1621_v39 }
 0x44a   : > { %v1627_v16 = vsel %vm1605_vm7, %v1623_v15, 0.0  ;;  %v1628_v42 = vsel %vm1606_vm8, %v1624_v26, 0.0  ;;  %v1698_v26 = vpop.permute.xlu2 %1697 }
 0x44b   : > { %v1629_v45 = vadd.f32 %v1627_v16, %v1448_v50  ;;  %v1630_v23 = vadd.f32 %v1628_v42, %v1449_v55  ;;  %2053 = vrot.lane.b32.xlu1 %v3183_v40, %s2549_s29  ;;  %s2086_s29 = sshll.u32 %s2082_s26, 4  ;;  %s2087_s29 = int_to_ptr.hbm [resolvable:$true] %s2086_s29 }
 0x44c   : > { %s2421_s15 = sshra.s32 %s2087_s29, 4  ;;  %s2422_s15 = int_to_ptr.hbm [resolvable:$true] %s2421_s15 }
 0x44d   : > { %v1631_v25 = vrot.slane %v1629_v45, 4  ;;  %v1637_v31 = vrot.slane %v1630_v23, 4  ;;  %s2423_s16 = scalar_lea.hbm %s2422_s15, 16  ;;  %p2428_p1 = scmp.lt.s32.totalorder %s2422_s15, %s3725_s9 }
 0x44e   : > { %p2424_p12 = scmp.ne.s32.totalorder %s2422_s15, %s2423_s16  ;;  %p2429_p2 = scmp.lt.s32.totalorder %s2427_s20, %s2423_s16 }
 0x44f   : > { %v1632_v24 = vadd.f32 %v1631_v25, %v1629_v45  ;;  %v1638_v38 = vadd.f32 %v1637_v31, %v1630_v23 }
 0x450   : > { %v1706_v42 = vpop.permute.xlu0 %1705  ;;  %p2425_p13 = pnand %p2424_p12, %p2641_p4  ;;  %p2430_p3 = por %p2429_p2, %p2428_p1 }
 0x451   : > { %v1633_v28 = vrot.slane %v1632_v24, 2  ;;  %v1639_v14 = vrot.slane %v1638_v38, 2 }
 0x452   : > { %v1738_v0 = vpop.permute.xlu2 %1737  ;;  %p2426_p0 = pneg %p2425_p13 }
 0x453   : > { %v1634_v5 = vadd.f32 %v1633_v28, %v1632_v24  ;;  %v1640_v7 = vadd.f32 %v1639_v14, %v1638_v38  ;;  %v2192_v24 = vld [vmem:[%s3721_s5] sm:$0xff]  ;;  %v2193_v28 = vld [vmem:[%s3721_s5 + $0x8] sm:$0xff] }
 0x454   : > { %p2431_p5 = pnand %p2430_p3, %p2426_p0 }
 0x455   : > { %v1635_v47 = vrot.slane %v1634_v5, 1  ;;  %v1641_v61 = vrot.slane %v1640_v7, 1 }
 0x457   : > { %v1636_v30 = vadd.f32 %v1635_v47, %v1634_v5  ;;  %v1642_v32 = vadd.f32 %v1641_v61, %v1640_v7 }
 0x459   : > { %v1650_v51 = vmul.f32 %v1649_v54, %v1636_v30  ;;  %v1651_v20 = vmul.f32 %v1649_v54, %v1642_v32 }
 0x45b   : > { %v1652_v8 = vsub.f32 %v1629_v45, %v1650_v51  ;;  %v1653_v19 = vsub.f32 %v1630_v23, %v1651_v20  ;;  %v1728_v51 = vpop.permute.xlu2 %1727 }
 0x45d   : > { %v1654_v48 = vmul.f32 %v1652_v8, %v1652_v8  ;;  %v1655_v1 = vmul.f32 %v1653_v19, %v1653_v19 }
 0x45f   : > { %v1656_v62 = vrot.slane %v1654_v48, 4  ;;  %v1662_v10 = vrot.slane %v1655_v1, 4 }
 0x461   : > { %v1657_v18 = vadd.f32 %v1656_v62, %v1654_v48  ;;  %v1663_v53 = vadd.f32 %v1662_v10, %v1655_v1 }
 0x463   : > { %v1658_v41 = vrot.slane %v1657_v18, 2  ;;  %v1664_v27 = vrot.slane %v1663_v53, 2 }
 0x465   : > { %v1659_v58 = vadd.f32 %v1658_v41, %v1657_v18  ;;  %v1665_v49 = vadd.f32 %v1664_v27, %v1663_v53 }
 0x467   : > { %v1660_v13 = vrot.slane %v1659_v58, 1  ;;  %v1666_v35 = vrot.slane %v1665_v49, 1 }
 0x469   : > { %v1661_v43 = vadd.f32 %v1660_v13, %v1659_v58  ;;  %v1667_v63 = vadd.f32 %v1666_v35, %v1665_v49 }
 0x46b   : > { %v1668_v56 = vmul.f32 %v1661_v43, %v1649_v54  ;;  %v1669_v33 = vmul.f32 %v1667_v63, %v1649_v54 }
 0x46d   : > { %v1670_v37 = vadd.f32 1e-12, %v1668_v56  ;;  %v1671_v29 = vadd.f32 1e-12, %v1669_v33 }
 0x46f   : > { %2368 = vrsqrt.f32 %v1670_v37  ;;  %vm1678_vm12 = vweird.f32 %v1670_v37  ;;  %vm1688_vm14 = vweird.f32 %v1671_v29 }
 0x470   : > { %2370 = vrsqrt.f32 %v1671_v29 }
 0x475   : > { %v2369_v17 = vpop.eup %2368 }
 0x476   : > { %v2371_v46 = vpop.eup %2370  ;;  %v1673_v4 = vmul.f32 %v2369_v17, %v1670_v37  ;;  %vm1679_vm10 = vweird.f32 %v2369_v17 }
 0x477   : > { %v1683_v36 = vmul.f32 %v2371_v46, %v1671_v29  ;;  %vm1689_vm11 = vweird.f32 %v2371_v46  ;;  %vm1680_vm13 = vmor %vm1678_vm12, %vm1679_vm10 }
 0x478   : > { %v1674_v34 = vmul.f32 %v2369_v17, %v1673_v4  ;;  %vm1690_vm15 = vmor %vm1688_vm14, %vm1689_vm11  ;;  %vm2059_vm11 = vcmask 629760  }
 0x479   : > { %v1684_v21 = vmul.f32 %v2371_v46, %v1683_v36 }
 0x47a   : > { %v1675_v2 = vmul.f32 0.5, %v1674_v34 }
 0x47b   : > { %v1685_v11 = vmul.f32 0.5, %v1684_v21 }
 0x47c   : > { %v1676_v60 = vsub.f32 1.5, %v1675_v2 }
 0x47d   : > { %v1686_v57 = vsub.f32 1.5, %v1685_v11 }
 0x47e   : > { %v1677_v39 = vmul.f32 %v2369_v17, %v1676_v60 }
 0x47f   : > { %v1687_v59 = vmul.f32 %v2371_v46, %v1686_v57 }
 0x480   : > { %v1681_v9 = vsel %vm1680_vm13, %v2369_v17, %v1677_v39 }
 0x481   : > { %v1691_v50 = vsel %vm1690_vm15, %v2371_v46, %v1687_v59  ;;  %v1692_v55 = vmul.f32 %v1681_v9, %v1652_v8 }
 0x482   : > { %v1693_v15 = vmul.f32 %v1691_v50, %v1653_v19 }
 0x483   : > { %v1700_v16 = vmul.f32 %v1698_v26, %v1692_v55 }
 0x484   : > { %v1701_v6 = vmul.f32 %v1698_v26, %v1693_v15 }
 0x485   : > { %v1708_v45 = vadd.f32 %v1706_v42, %v1700_v16 }
 0x486   : > { %v1709_v23 = vadd.f32 %v1706_v42, %v1701_v6 }
 0x487   : > { %v1714_v25 = vpack.c.bf16 %v1708_v45, %v1708_v45 }
 0x488   : > { %v1715_v31 = vpack.c.bf16 %v1709_v23, %v1709_v23 }
 0x489   : > { %v1759_v44 = vsel %vm1757_vm0, %v1714_v25, 0 }
 0x48a   : > { %1771 = vmatpush.bf16.msra.mxu0 %v1759_v44  ;;  %v1762_v38 = vsel %vm1757_vm0, %v1715_v31, 0 }
 0x48b   : > { %1790 = vmatpush.bf16.msra.mxu1 %v1762_v38 }
 0x48d   : > { %2181 = vmatmul.msk.bf16.vlgmr.msra.gmra.mxu0 %vm1750_vm1, %v2192_v24 }
 0x48e   : > { %2183 = vmatmul.msk.bf16.vlgmr.msra.gmra.mxu1 %vm1750_vm1, %v2192_v24 }
 0x49d   : > { %2182 = vmatmul.msk.bf16.gmra.mxu0 %vm1750_vm1, %v2193_v28 }
 0x49e   : > { %2184 = vmatmul.msk.bf16.gmra.mxu1 %vm1750_vm1, %v2193_v28 }
 0x4ad   : > { %v1733_v14 = vpop.permute.xlu1 %1732 }
 0x4b5   : > { %v1723_v5 = vpop.permute.xlu1 %1722 }
 0x50a   : > { %v1773_v7 = vpop.f32.mrf.mxu0 }
 0x50b   : > { %v3543_v47 = vadd.f32 %v1773_v7, %v1723_v5  ;;  %v1792_v61 = vpop.f32.mrf.mxu1 }
 0x50c   : > { %v3545_v54 = vadd.f32 %v1792_v61, %v1723_v5 }
 0x50d   : > { %v3548_v30 = vmul.f32 0.70710677, %v3543_v47 }
 0x50e   : > { %v3552_v40 = vmul.f32 0.70710677, %v3545_v54 }
 0x50f   : > { %v1826_v32 = vand.u32 2147483647, %v3548_v30  ;;  %vm1810_vm2 = vcmp.ge.f32.partialorder %v3548_v30, 0.0 }
 0x510   : > { %v1827_v8 = vand.u32 2147483647, %v3552_v40  ;;  %vm1811_vm7 = vcmp.ge.f32.partialorder %v3552_v40, 0.0 }
 0x511   : > { %v1834_v12 = vmul.f32 0.3275911, %v1826_v32  ;;  %v1858_v46 = vmul.f32 %v1826_v32, %v1826_v32 }
 0x512   : > { %v1775_v52 = vpop.f32.mrf.mxu0  ;;  %v1835_v18 = vmul.f32 0.3275911, %v1827_v8  ;;  %v1859_v36 = vmul.f32 %v1827_v8, %v1827_v8 }
 0x513   : > { %v1842_v20 = vadd.f32 1.0, %v1834_v12  ;;  %v3555_v19 = vadd.f32 %v1775_v52, %v1728_v51  ;;  %v1794_v48 = vpop.f32.mrf.mxu1  ;;  %v1866_v55 = vsub.f32 0.0, %v1858_v46 }
 0x514   : > { %v3557_v1 = vadd.f32 %v1794_v48, %v1728_v51  ;;  %v1843_v35 = vadd.f32 1.0, %v1835_v18  ;;  %v1867_v6 = vsub.f32 0.0, %v1859_v36 }
 0x515   : > { %2372 = vrcp.f32 %v1842_v20  ;;  %v3560_v62 = vmul.f32 0.70710677, %v3555_v19 }
 0x516   : > { %v3563_v10 = vmul.f32 0.70710677, %v3557_v1  ;;  %v3603_v61 = vmul.f32 1.442695, %v1867_v6 }
 0x517   : > { %v1828_v53 = vand.u32 2147483647, %v3560_v62  ;;  %vm1812_vm3 = vcmp.ge.f32.partialorder %v3560_v62, 0.0 }
 0x518   : > { %v1829_v41 = vand.u32 2147483647, %v3563_v10  ;;  %vm1813_vm8 = vcmp.ge.f32.partialorder %v3563_v10, 0.0 }
 0x519   : > { %v1836_v27 = vmul.f32 0.3275911, %v1828_v53  ;;  %v1860_v34 = vmul.f32 %v1828_v53, %v1828_v53 }
 0x51a   : > { %v1837_v58 = vmul.f32 0.3275911, %v1829_v41  ;;  %v1778_v49 = vpop.f32.mrf.mxu0  ;;  %v1861_v2 = vmul.f32 %v1829_v41, %v1829_v41 }
 0x51b   : > { %v3567_v13 = vpop.eup %2372  ;;  %v1844_v43 = vadd.f32 1.0, %v1836_v27  ;;  %v3569_v63 = vadd.f32 %v1778_v49, %v1733_v14  ;;  %v1797_v56 = vpop.f32.mrf.mxu1  ;;  %v1868_v45 = vsub.f32 0.0, %v1860_v34 }
 0x51c   : > { %v3571_v33 = vadd.f32 %v1797_v56, %v1733_v14  ;;  %v1845_v29 = vadd.f32 1.0, %v1837_v58  ;;  %v1890_v3 = vmul.f32 1.0614054, %v3567_v13  ;;  %v1869_v25 = vsub.f32 0.0, %v1861_v2 }
 0x51d   : > { %2374 = vrcp.f32 %v1844_v43  ;;  %v3574_v37 = vmul.f32 0.70710677, %v3569_v63  ;;  %v1878_v32 = vmul.f32 1.442695, %v1868_v45  ;;  %v1990_v30 = vmul.f32 0.5, %v3569_v63 }
 0x51e   : > { %v3577_v22 = vmul.f32 0.70710677, %v3571_v33  ;;  %2376 = vrcp.f32 %v1843_v35  ;;  %v1898_v57 = vadd.f32 -1.4531521, %v1890_v3  ;;  %v1880_v52 = vmul.f32 1.442695, %v1869_v25 }
 0x51f   : > { %v1830_v17 = vand.u32 2147483647, %v3574_v37  ;;  %2378 = vrcp.f32 %v1845_v29  ;;  %vm1814_vm4 = vcmp.ge.f32.partialorder %v3574_v37, 0.0 }
 0x520   : > { %v1831_v4 = vand.u32 2147483647, %v3577_v22  ;;  %v1906_v44 = vmul.f32 %v3567_v13, %v1898_v57  ;;  %vm1815_vm6 = vcmp.ge.f32.partialorder %v3577_v22, 0.0 }
 0x521   : > { %v1838_v21 = vmul.f32 0.3275911, %v1830_v17  ;;  %v1862_v24 = vmul.f32 %v1830_v17, %v1830_v17 }
 0x522   : > { %v1839_v11 = vmul.f32 0.3275911, %v1831_v4  ;;  %v1780_v60 = vpop.f32.mrf.mxu0  ;;  %v1863_v20 = vmul.f32 %v1831_v4, %v1831_v4  ;;  %v1914_v48 = vadd.f32 1.4214138, %v1906_v44 }
 0x523   : > { %v3582_v39 = vpop.eup %2374  ;;  %v1846_v59 = vadd.f32 1.0, %v1838_v21  ;;  %v3584_v9 = vadd.f32 %v1780_v60, %v1738_v0  ;;  %v1799_v50 = vpop.f32.mrf.mxu1  ;;  %v1870_v53 = vsub.f32 0.0, %v1862_v24 }
 0x524   : > { %v1847_v15 = vadd.f32 1.0, %v1839_v11  ;;  %v3586_v26 = vadd.f32 %v1799_v50, %v1738_v0  ;;  %v1892_v16 = vmul.f32 1.0614054, %v3582_v39  ;;  %v3589_v42 = vpop.eup %2376  ;;  %v1874_v0 = vmul.f32 1.442695, %v1866_v55 }
 0x525   : > { %2380 = vrcp.f32 %v1846_v59  ;;  %v3592_v23 = vmul.f32 0.70710677, %v3584_v9  ;;  %v3599_v14 = vpop.eup %2378  ;;  %v1891_v7 = vmul.f32 1.0614054, %v3589_v42  ;;  %v1871_v46 = vsub.f32 0.0, %v1863_v20 }
 0x526   : > { %2382 = vrcp.f32 %v1847_v15  ;;  %v3595_v31 = vmul.f32 0.70710677, %v3586_v26  ;;  %v1900_v28 = vadd.f32 -1.4531521, %v1892_v16  ;;  %v1893_v58 = vmul.f32 1.0614054, %v3599_v14 }
 0x527   : > { %v1832_v38 = vand.u32 2147483647, %v3592_v23  ;;  %v1899_v56 = vadd.f32 -1.4531521, %v1891_v7  ;;  %v1922_v36 = vmul.f32 %v3567_v13, %v1914_v48  ;;  %v1882_v34 = vmul.f32 1.442695, %v1870_v53 }
 0x528   : > { %v1833_v5 = vand.u32 2147483647, %v3595_v31  ;;  %v1908_v51 = vmul.f32 %v3582_v39, %v1900_v28  ;;  %v1901_v2 = vadd.f32 -1.4531521, %v1893_v58  ;;  %v1884_v44 = vmul.f32 1.442695, %v1871_v46 }
 0x529   : > { %v1840_v12 = vmul.f32 0.3275911, %v1832_v38  ;;  %v1864_v29 = vmul.f32 %v1832_v38, %v1832_v38  ;;  %v1907_v57 = vmul.f32 %v3589_v42, %v1899_v56  ;;  %v1930_v6 = vadd.f32 -0.28449672, %v1922_v36 }
 0x52a   : > { %v1841_v8 = vmul.f32 0.3275911, %v1833_v5  ;;  %v1916_v27 = vadd.f32 1.4214138, %v1908_v51  ;;  %v1865_v50 = vmul.f32 %v1833_v5, %v1833_v5  ;;  %v1909_v15 = vmul.f32 %v3599_v14, %v1901_v2 }
 0x52b   : > { %v3606_v18 = vpop.eup %2380  ;;  %v1848_v41 = vadd.f32 1.0, %v1840_v12  ;;  %v1872_v59 = vsub.f32 0.0, %v1864_v29  ;;  %v1915_v45 = vadd.f32 1.4214138, %v1907_v57  ;;  %v1938_v58 = vmul.f32 %v3567_v13, %v1930_v6 }
 0x52c   : > { %v3609_v49 = vpop.eup %2382  ;;  %v1849_v35 = vadd.f32 1.0, %v1841_v8  ;;  %v1894_v43 = vmul.f32 1.0614054, %v3606_v18  ;;  %v1924_v17 = vmul.f32 %v3582_v39, %v1916_v27  ;;  %v1917_v38 = vadd.f32 1.4214138, %v1909_v15 }
 0x52d   : > { %2384 = vrcp.f32 %v1848_v41  ;;  %v1895_v3 = vmul.f32 1.0614054, %v3609_v49  ;;  %v1873_v51 = vsub.f32 0.0, %v1865_v50  ;;  %v1886_v53 = vmul.f32 1.442695, %v1872_v59 }
 0x52e   : > { %2386 = vrcp.f32 %v1849_v35  ;;  %v1902_v4 = vadd.f32 -1.4531521, %v1894_v43  ;;  %v1932_v60 = vadd.f32 -0.28449672, %v1924_v17  ;;  %v1925_v8 = vmul.f32 %v3599_v14, %v1917_v38 }
 0x52f   : > { %2388 = vpow2.f32 %v1874_v0  ;;  %v1903_v21 = vadd.f32 -1.4531521, %v1895_v3  ;;  %v1946_v59 = vadd.f32 0.2548296, %v1938_v58  ;;  %vm1816_vm9 = vcmp.ge.f32.partialorder %v3592_v23, 0.0 }
 0x530   : > { %2390 = vpow2.f32 %v1878_v32  ;;  %v1910_v11 = vmul.f32 %v3606_v18, %v1902_v4  ;;  %v1940_v7 = vmul.f32 %v3582_v39, %v1932_v60  ;;  %v1923_v32 = vmul.f32 %v3589_v42, %v1915_v45 }
 0x531   : > { %v1911_v55 = vmul.f32 %v3609_v49, %v1903_v21  ;;  %2392 = vpow2.f32 %v1880_v52  ;;  %v1933_v4 = vadd.f32 -0.28449672, %v1925_v8  ;;  %vm1817_vm10 = vcmp.ge.f32.partialorder %v3595_v31, 0.0 }
 0x532   : > { %v1918_v16 = vadd.f32 1.4214138, %v1910_v11  ;;  %2394 = vpow2.f32 %v1882_v34  ;;  %v1931_v56 = vadd.f32 -0.28449672, %v1923_v32  ;;  %v1948_v46 = vadd.f32 0.2548296, %v1940_v7 }
 0x533   : > { %v3619_v25 = vpop.eup %2384  ;;  %v1919_v24 = vadd.f32 1.4214138, %v1911_v55  ;;  %2396 = vpow2.f32 %v1884_v44  ;;  %v1888_v34 = vmul.f32 1.442695, %v1873_v51  ;;  %v1941_v50 = vmul.f32 %v3599_v14, %v1933_v4 }
 0x534   : > { %v3621_v28 = vpop.eup %2386  ;;  %v1896_v0 = vmul.f32 1.0614054, %v3619_v25  ;;  %v1926_v5 = vmul.f32 %v3606_v18, %v1918_v16  ;;  %v1939_v11 = vmul.f32 %v3589_v42, %v1931_v56  ;;  %2398 = vpow2.f32 %v3603_v61 }
 0x535   : > { %v2389_v12 = vpop.eup %2388  ;;  %v1897_v52 = vmul.f32 1.0614054, %v3621_v28  ;;  %v1927_v20 = vmul.f32 %v3609_v49, %v1919_v24  ;;  %v1956_v44 = vmul.f32 %v3582_v39, %v1948_v46  ;;  %v1949_v24 = vadd.f32 0.2548296, %v1941_v50 }
 0x536   : > { %v2391_v48 = vpop.eup %2390  ;;  %v1904_v41 = vadd.f32 -1.4531521, %v1896_v0  ;;  %v1934_v27 = vadd.f32 -0.28449672, %v1926_v5  ;;  %v1947_v16 = vadd.f32 0.2548296, %v1939_v11  ;;  %v1954_v51 = vmul.f32 %v3567_v13, %v1946_v59 }
 0x537   : > { %v1905_v35 = vadd.f32 -1.4531521, %v1897_v52  ;;  %v1935_v43 = vadd.f32 -0.28449672, %v1927_v20  ;;  %v2393_v29 = vpop.eup %2392  ;;  %v1957_v61 = vmul.f32 %v3599_v14, %v1949_v24  ;;  %2400 = vpow2.f32 %v1886_v53 }
 0x538   : > { %v1912_v3 = vmul.f32 %v3619_v25, %v1904_v41  ;;  %v1942_v17 = vmul.f32 %v3606_v18, %v1934_v27  ;;  %v2395_v36 = vpop.eup %2394  ;;  %v1955_v8 = vmul.f32 %v3589_v42, %v1947_v16  ;;  %2402 = vpow2.f32 %v1888_v34 }
 0x539   : > { %v1913_v21 = vmul.f32 %v3621_v28, %v1905_v35  ;;  %v1943_v2 = vmul.f32 %v3609_v49, %v1935_v43  ;;  %v2397_v38 = vpop.eup %2396  ;;  %v1962_v27 = vmul.f32 %v2389_v12, %v1954_v51  ;;  %v2550_v43 = vmov -1.0  }
 0x53a   : > { %v1920_v60 = vadd.f32 1.4214138, %v1912_v3  ;;  %v1950_v57 = vadd.f32 0.2548296, %v1942_v17  ;;  %v2399_v41 = vpop.eup %2398  ;;  %v1823_v22 = vsel %vm1815_vm6, 1.0, %v2550_v43  ;;  %v1818_v11 = vsel %vm1810_vm2, 1.0, %v2550_v43 }
 0x53b   : > { %v1921_v55 = vadd.f32 1.4214138, %v1913_v21  ;;  %v1951_v15 = vadd.f32 0.2548296, %v1943_v2  ;;  %v1963_v35 = vmul.f32 %v2399_v41, %v1955_v8  ;;  %v1970_v34 = vsub.f32 1.0, %v1962_v27  ;;  %v2056_v27 = vpop.permute.xlu2 %2055 }
 0x53c   : > { %v1928_v6 = vmul.f32 %v3619_v25, %v1920_v60  ;;  %v1958_v45 = vmul.f32 %v3606_v18, %v1950_v57  ;;  %v1964_v18 = vmul.f32 %v2391_v48, %v1956_v44  ;;  %v1820_v48 = vsel %vm1812_vm3, 1.0, %v2550_v43 }
 0x53d   : > { %v1929_v0 = vmul.f32 %v3621_v28, %v1921_v55  ;;  %v1959_v5 = vmul.f32 %v3609_v49, %v1951_v15  ;;  %v1965_v49 = vmul.f32 %v2393_v29, %v1957_v61  ;;  %v2401_v3 = vpop.eup %2400  ;;  %v1822_v29 = vsel %vm1814_vm4, 1.0, %v2550_v43 }
 0x53e   : > { %v1936_v7 = vadd.f32 -0.28449672, %v1928_v6  ;;  %v1966_v32 = vmul.f32 %v2395_v36, %v1958_v45  ;;  %v1972_v56 = vsub.f32 1.0, %v1964_v18  ;;  %v2403_v46 = vpop.eup %2402  ;;  %v1821_v37 = vsel %vm1813_vm8, 1.0, %v2550_v43 }
 0x53f   : > { %v1937_v52 = vadd.f32 -0.28449672, %v1929_v0  ;;  %v1967_v20 = vmul.f32 %v2397_v38, %v1959_v5  ;;  %v1973_v12 = vsub.f32 1.0, %v1965_v49  ;;  %v1819_v57 = vsel %vm1811_vm7, 1.0, %v2550_v43 }
 0x540   : > { %v1944_v39 = vmul.f32 %v3619_v25, %v1936_v7  ;;  %v1974_v53 = vsub.f32 1.0, %v1966_v32  ;;  %v1824_v23 = vsel %vm1816_vm9, 1.0, %v2550_v43  ;;  %v1825_v31 = vsel %vm1817_vm10, 1.0, %v2550_v43 }
 0x541   : > { %v1945_v13 = vmul.f32 %v3621_v28, %v1937_v52  ;;  %v1975_v58 = vsub.f32 1.0, %v1967_v20  ;;  %v1981_v50 = vmul.f32 %v1973_v12, %v1821_v37  ;;  %v1978_v16 = vmul.f32 %v1970_v34, %v1818_v11 }
 0x542   : > { %v1952_v14 = vadd.f32 0.2548296, %v1944_v39  ;;  %v1982_v36 = vmul.f32 %v1974_v53, %v1822_v29  ;;  %v1992_v10 = vmul.f32 0.5, %v3584_v9  ;;  %v1991_v0 = vmul.f32 0.5, %v3571_v33 }
 0x543   : > { %v1953_v42 = vadd.f32 0.2548296, %v1945_v13  ;;  %v1983_v2 = vmul.f32 %v1975_v58, %v1823_v22  ;;  %v1993_v40 = vmul.f32 0.5, %v3586_v26  ;;  %v1997_v7 = vadd.f32 1.0, %v1981_v50 }
 0x544   : > { %v1960_v62 = vmul.f32 %v3619_v25, %v1952_v14  ;;  %v1971_v25 = vsub.f32 1.0, %v1963_v35  ;;  %v1998_v15 = vadd.f32 1.0, %v1982_v36  ;;  %v1988_v32 = vmul.f32 0.5, %v3555_v19 }
 0x545   : > { %v1961_v17 = vmul.f32 %v3621_v28, %v1953_v42  ;;  %v1980_v28 = vmul.f32 %v1972_v56, %v1820_v48  ;;  %v1999_v45 = vadd.f32 1.0, %v1983_v2  ;;  %v1994_v52 = vadd.f32 1.0, %v1978_v16 }
 0x546   : > { %v1968_v4 = vmul.f32 %v2401_v3, %v1960_v62  ;;  %v1979_v44 = vmul.f32 %v1971_v25, %v1819_v57  ;;  %v2006_v51 = vmul.f32 %v1998_v15, %v1990_v30  ;;  %v1989_v20 = vmul.f32 0.5, %v3557_v1  ;;  %v2010_v1 = vld [vmem:[%s3723_s7] sm:$0xf] }
 0x547   : > { %v1969_v21 = vmul.f32 %v2403_v46, %v1961_v17  ;;  %v1996_v38 = vadd.f32 1.0, %v1980_v28  ;;  %v2007_v8 = vmul.f32 %v1999_v45, %v1991_v0  ;;  %v1986_v9 = vmul.f32 0.5, %v3543_v47  ;;  %v2019_v47 = vpop.permute.xlu0 %2018 }
 0x548   : > { %v1976_v60 = vsub.f32 1.0, %v1968_v4  ;;  %v1995_v63 = vadd.f32 1.0, %v1979_v44  ;;  %v1987_v33 = vmul.f32 0.5, %v3545_v54  ;;  %v2005_v13 = vmul.f32 %v1997_v7, %v1989_v20  ;;  %v2054_v54 = vpop.permute.xlu1 %2053 }
 0x549   : > { %v1977_v59 = vsub.f32 1.0, %v1969_v21  ;;  %v2004_v41 = vmul.f32 %v1996_v38, %v1988_v32  ;;  %v2002_v19 = vmul.f32 %v1994_v52, %v1986_v9  ;;  %v2060_v35 = vsel %vm2059_vm11, %v2054_v54, %v2056_v27 }
 0x54a   : > { %v1984_v55 = vmul.f32 %v1976_v60, %v1824_v23  ;;  %v2003_v49 = vmul.f32 %v1995_v63, %v1987_v33 }
 0x54b   : > { %v1985_v6 = vmul.f32 %v1977_v59, %v1825_v31  ;;  %v2011_v14 = vpack.c.bf16 %v2004_v41, %v2002_v19 }
 0x54c   : > { %v2000_v24 = vadd.f32 1.0, %v1984_v55  ;;  %v2012_v53 = vpack.c.bf16 %v2005_v13, %v2003_v49 }
 0x54d   : > { %v2001_v5 = vadd.f32 1.0, %v1985_v6 }
 0x54e   : > { %v2008_v61 = vmul.f32 %v2000_v24, %v1992_v10 }
 0x54f   : > { %v2009_v39 = vmul.f32 %v2001_v5, %v1993_v40  ;;  %v2058_v42 = vpop.permute.xlu0 %2057 }
 0x550   : > { %v2013_v18 = vpack.c.bf16 %v2008_v61, %v2006_v51  ;;  %v2061_v62 = vsel %vm2059_vm11, %v2056_v27, %v2058_v42 }
 0x551   : > { %v2014_v26 = vpack.c.bf16 %v2009_v39, %v2007_v8 }
 0x552   : > { %2030 = vmatpush.bf16.msra.mxu2 %v2013_v18 }
 0x553   : > { %2043 = vmatpush.bf16.msra.mxu3 %v2014_v26 }
 0x556   : > { %2031 = vmatpush.bf16.msra.mxu2 %v2011_v14 }
 0x557   : > { %2044 = vmatpush.bf16.msra.mxu3 %v2012_v53 }
 0x559   : > { %2185 = vmatmul.msk.bf16.vlgmr.msra.gmra.mxu2 %vm536_vm5, %v2010_v1 }
 0x55a   : > { %2186 = vmatmul.msk.bf16.vlgmr.msra.gmra.mxu3 %vm536_vm5, %v2010_v1 }
 0x5dc   : > { %v2033_v58 = vpop.f32.mrf.mxu2 }
 0x5dd   : > { %v2034_v43 = vadd.f32 %v2033_v58, %v2019_v47  ;;  %v2046_v48 = vpop.f32.mrf.mxu3 }
 0x5de   : > { %v2047_v56 = vadd.f32 %v2046_v48, %v2019_v47 }
 0x5df   : > { %v2064_v3 = vadd.f32 %v2060_v35, %v2034_v43 }
 0x5e0   : > { %v2065_v29 = vadd.f32 %v2061_v62, %v2047_v56 }
 0x5e1   : > { %2066 = vst [vmem:[%s349_s27] sm:$0xff] %v2064_v3 }
 0x5e2   : > { %2067 = vst [vmem:[%s349_s27 + $0x8] sm:$0xff] %v2065_v29 }
 0x5e3   : > { %2434 = shalt.err (!%p2431_p5)
}
 0x5e4   : > { %2196 = dma.vmem_to_hbm [thread:$0]  (%p2641_p4), %s2085_s28, 256, %s2087_s29, %s2069_s12   ;;  %v2035_v22 = vpop.f32.mrf.mxu2 }
 0x5e5   : > { %v2048_v17 = vpop.f32.mrf.mxu3 }
 0x5e6 PF: > { %p2202_p6 = scmp.ge.s32.totalorder %s2485_s14, 2  ;;  %s2098_s18 = sand.u32 1, %s2465_s30  }
 0x5e7   : > { %s2099_s27 = scalar_lea.sflag [#allocation3], %s2098_s18 }
 0x5e8   : > { %p2199_p7 = pnand %p2202_p6, %p2648_p8 }
 0x5ea   : > { %p2200_p9 = pneg %p2199_p7 }
 0x5ec   : > { %2460 = dma.done.wait (%p2200_p9), %s2099_s27, 256  }
 0x5ed   : > { %2462 = vsyncadd (%p2200_p9), %s2099_s27, 4294967040  ;;  %s22_s14 = sadd.s32 1, %s2485_s14   ;;  %s3734_s30 = smov %s2469_s10 }
 0x5ee   : > { %p19_p10 = scmp.ge.s32.totalorder %s22_s14, 4   ;;  %s3735_s10 = smov %s2473_s11 }
 0x5ef   : > { %s3736_s11 = smov %s2654_s22  ;;  %s3737_s12 = smov %s2481_s13 }
 0x5f0   : > { %s3738_s13 = smov %s3740_s17  ;;  %21 = sbr.rel (!%p19_p10) target bundleno = 4 (0x4), region = 91 }
 0x5f5   :  { %2105 = vsyncpa [#allocation3], 1 }
 0x5f6   :  { %2107 = vsyncpa [#allocation3 + $0x1], 1 }

</bundles_post_ra>
